<compile_context>
chip_gen: v6e
topology: v6e:2x2x1
jax: 0.10.0
libtpu: 0.0.40
codegen_flags: <defaults>
</compile_context>

<pallas_src>
import functools

import jax
import jax.numpy as jnp
from jax import lax
from jax.experimental import pallas as pl
from jax.experimental.pallas import tpu as pltpu

_LANE = 128


def _round_up(a, b):
    return (a + b - 1) // b * b


def _pick_vmem_limit():
    # v5e/v6e: 128 MiB physical VMEM, v7x: 64 MiB.  Leave 25% headroom and cap
    # at 96 MiB (review: raise the 32 MiB scoped default on v5e/v6e).
    try:
        cap = int(pltpu.get_tpu_info().vmem_capacity_bytes)
    except Exception:
        cap = 64 * 1024 * 1024
    return int(min(cap * 3 // 4, 96 * 1024 * 1024))


def _resident_spec(block_shape, index_map):
    """BlockSpec for a grid-invariant operand: one VMEM buffer is enough."""
    if hasattr(pl, "Buffered"):
        try:
            return pl.BlockSpec(block_shape, index_map,
                                pipeline_mode=pl.Buffered(1))
        except TypeError:  # older BlockSpec without pipeline_mode
            pass
    return pl.BlockSpec(block_shape, index_map)


# --------------------------------------------------------------------------
# Fused conv tile: accumulate the KH*KW shifted matmuls for one output tile.
# --------------------------------------------------------------------------
def _conv_tile(x_ref, w_ref, ht, *, KH, KW, stride, dilation, TH, WOUT):
    """x_ref: (Hp, Wp, Cin) resident padded NHWC image (bf16).
       w_ref: (KH*KW, Cin, C_pad) resident weights (bf16).
       Returns the (TH*WOUT, C_pad) f32 conv tile for output rows
       [ht*TH, ht*TH + TH)."""
    h0 = ht * (TH * stride)
    acc = None
    for kh in range(KH):
        for kw in range(KW):
            if stride == 1:
                rows = pl.ds(h0 + kh * dilation, TH)
                cols = pl.ds(kw * dilation, WOUT)
            else:
                rows = pl.ds(h0 + kh * dilation, TH, stride)
                cols = pl.ds(kw * dilation, WOUT, stride)
            a = x_ref[rows, cols, :]                       # (TH, WOUT, Cin) bf16
            a = a.reshape(TH * WOUT, a.shape[-1])
            c = jnp.dot(a, w_ref[kh * KW + kw],            # MXU, f32 accumulate
                        preferred_element_type=jnp.float32)
            acc = c if acc is None else acc + c
    return acc


# --------------------------------------------------------------------------
# Pass 1: per-channel sum / sum-of-squares (per-batch partials).
# --------------------------------------------------------------------------
def _stats_kernel(x_ref, w_ref, s_ref, *, KH, KW, stride, dilation, TH, WOUT,
                  HOUT):
    ht = pl.program_id(1)
    y = _conv_tile(x_ref, w_ref, ht, KH=KH, KW=KW, stride=stride,
                   dilation=dilation, TH=TH, WOUT=WOUT)

    # Output rows past the true Hout (tail tile of the padded-H grid) can
    # still touch real image rows -> mask them out of the statistics.
    valid = jnp.clip(HOUT - ht * TH, 0, TH) * WOUT
    ridx = lax.broadcasted_iota(jnp.int32, (TH * WOUT, 1), 0)
    y = jnp.where(ridx < valid, y, 0.0)

    # Exact f32 vector reductions (review: avoid possible MXU truncation of
    # the f32 ones-matmul feeding the E[y^2]-E[y]^2 cancellation).
    s1 = jnp.sum(y, axis=0, keepdims=True)          # (1, C_pad) sum(y)
    s2 = jnp.sum(y * y, axis=0, keepdims=True)      # (1, C_pad) sum(y*y)

    @pl.when(ht == 0)
    def _():
        s_ref[...] = jnp.zeros_like(s_ref)

    s_ref[...] += jnp.concatenate([s1, s2], axis=0)


# --------------------------------------------------------------------------
# Pass 2: recompute conv tile, apply folded BN scale/shift + activation.
# --------------------------------------------------------------------------
def _apply_kernel(x_ref, w_ref, scale_ref, shift_ref, o_ref, *, KH, KW, stride,
                  dilation, TH, WOUT, activation, prelu_alpha):
    ht = pl.program_id(1)
    y = _conv_tile(x_ref, w_ref, ht, KH=KH, KW=KW, stride=stride,
                   dilation=dilation, TH=TH, WOUT=WOUT)

    # Folded BN: one multiply + one add per element.
    y = y * scale_ref[...] + shift_ref[...]

    if activation == 'HS':            # Hardswish
        y = y * jnp.clip(y + 3.0, 0.0, 6.0) * (1.0 / 6.0)
    elif activation == 'PRE':         # PReLU (single shared alpha)
        # TODO(synk): per-channel PReLU would need a (1, C_pad) alpha operand.
        y = jnp.where(y >= 0.0, y, prelu_alpha * y)
    elif activation is not None:      # 'RE' -> ReLU
        y = jnp.maximum(y, 0.0)

    o_ref[...] = y.reshape(TH, WOUT, -1).astype(o_ref.dtype)


# --------------------------------------------------------------------------
# Wrapper.
# --------------------------------------------------------------------------
def conv2d_bn_activation(x_nchw, weight_oihw, gamma, beta, *, stride=1,
                         dilation=1, eps=0.01, activation='RE',
                         prelu_alpha=0.25, block_rows=1024, out_dtype=None,
                         out_layout='NCHW'):
    N, Cin, H, W = x_nchw.shape
    Cout, Cin_w, KH, KW = weight_oihw.shape
    assert Cin == Cin_w, "only groups=1 (the module default) is implemented"

    pad_h = (KH - 1) // 2 * dilation
    pad_w = (KW - 1) // 2 * dilation
    Hout = (H + 2 * pad_h - dilation * (KH - 1) - 1) // stride + 1
    Wout = (W + 2 * pad_w - dilation * (KW - 1) - 1) // stride + 1
    out_dtype = x_nchw.dtype if out_dtype is None else out_dtype

    # Output-row tiling: target ~block_rows (= TH*Wout) matmul rows per step.
    TH = max(1, min(Hout, max(1, block_rows // max(Wout, 1))))
    n_h = pl.cdiv(Hout, TH)
    Hout_pad = n_h * TH

    # Lane-dense output channels; contraction (input) channels only need
    # sublane (8) alignment.
    C_pad = _round_up(Cout, _LANE)
    Cin_pad = _round_up(Cin, 8)

    # NCHW -> NHWC (channels on lanes), bf16 operands (f32 MXU accumulation),
    # one fused zero-pad: conv halo + H tiling overhang + Cin alignment.  All
    # padding is zero, so tile rows past Hout are masked in pass 1 and sliced
    # off after pass 2.
    xh = jnp.transpose(x_nchw, (0, 2, 3, 1)).astype(jnp.bfloat16)
    Hp = max(H + 2 * pad_h, (Hout_pad - 1) * stride + (KH - 1) * dilation + 1)
    Wp = W + 2 * pad_w
    xp = jnp.pad(xh, ((0, 0), (pad_h, Hp - pad_h - H), (pad_w, pad_w),
                      (0, Cin_pad - Cin)))

    # Weights (Cout, Cin, KH, KW) -> (KH*KW, Cin_pad, C_pad) bf16.
    wq = jnp.transpose(weight_oihw, (2, 3, 1, 0)).astype(jnp.bfloat16)
    wq = jnp.pad(wq, ((0, 0), (0, 0), (0, Cin_pad - Cin), (0, C_pad - Cout)))
    wq = wq.reshape(KH * KW, Cin_pad, C_pad)

    gamma_p = jnp.pad(gamma.astype(jnp.float32), (0, C_pad - Cout),
                      constant_values=1.0)
    beta_p = jnp.pad(beta.astype(jnp.float32), (0, C_pad - Cout))

    vmem_limit = _pick_vmem_limit()
    grid = (N, n_h)
    # Per-image input block: constant block index along the h-tile axis, so it
    # stays resident in VMEM and is only re-DMA'd when the batch index changes.
    x_spec = pl.BlockSpec((None, Hp, Wp, Cin_pad), lambda n, h: (n, 0, 0, 0))
    w_spec = _resident_spec((KH * KW, Cin_pad, C_pad), lambda n, h: (0, 0, 0))
    conv_args = dict(KH=KH, KW=KW, stride=stride, dilation=dilation, TH=TH,
                     WOUT=Wout)

    # ---- pass 1: per-channel sum / sum-of-squares, per-batch partials so the
    # ---- leading "parallel" axis lets v7x's two TensorCores split the work --
    stats = pl.pallas_call(
        functools.partial(_stats_kernel, HOUT=Hout, **conv_args),
        out_shape=jax.ShapeDtypeStruct((N, 2, C_pad), jnp.float32),
        grid=grid,
        in_specs=[x_spec, w_spec],
        out_specs=pl.BlockSpec((None, 2, C_pad), lambda n, h: (n, 0, 0)),
        compiler_params=pltpu.CompilerParams(
            dimension_semantics=("parallel", "arbitrary"),
            vmem_limit_bytes=vmem_limit),
    )(xp, wq)

    # ---- fold BN into one per-channel scale/shift (tiny (C_pad,) math) ----
    # NOTE: var = E[y^2] - E[y]^2 in f32 sums; cancellation only becomes a
    # concern when |mean| >> std at very large N*H*W.
    count = float(N * Hout * Wout)                  # true element count
    total = jnp.sum(stats, axis=0)                  # merge per-batch partials
    mean = total[0] / count
    var = jnp.maximum(total[1] / count - mean * mean, 0.0)   # biased variance
    scale = gamma_p * lax.rsqrt(var + eps)
    shift = beta_p - mean * scale

    # ---- pass 2: recompute conv tiles, apply scale/shift + activation ----
    out_p = pl.pallas_call(
        functools.partial(_apply_kernel, activation=activation,
                          prelu_alpha=prelu_alpha, **conv_args),
        out_shape=jax.ShapeDtypeStruct((N, Hout_pad, Wout, C_pad), out_dtype),
        grid=grid,
        in_specs=[x_spec, w_spec,
                  _resident_spec((1, C_pad), lambda n, h: (0, 0)),
                  _resident_spec((1, C_pad), lambda n, h: (0, 0))],
        out_specs=pl.BlockSpec((None, TH, Wout, C_pad),
                               lambda n, h: (n, h, 0, 0)),
        compiler_params=pltpu.CompilerParams(
            dimension_semantics=("parallel", "parallel"),
            vmem_limit_bytes=vmem_limit),
    )(xp, wq, scale.reshape(1, C_pad), shift.reshape(1, C_pad))

    out = out_p[:, :Hout, :, :Cout]
    if out_layout == 'NHWC':
        return out
    return jnp.transpose(out, (0, 3, 1, 2))          # module contract: NCHW


if __name__ == "__main__":
    key = jax.random.PRNGKey(0)
    k1, k2, k3, k4 = jax.random.split(key, 4)

    N, Cin, H, W = 2, 4, 16, 16
    Cout, ksz = 8, 3

    x = jax.random.normal(k1, (N, Cin, H, W), jnp.float32)
    weight = jax.random.normal(k2, (Cout, Cin, ksz, ksz), jnp.float32) * 0.1
    gamma = jax.random.uniform(k3, (Cout,), jnp.float32, 0.5, 1.5)
    beta = jax.random.normal(k4, (Cout,), jnp.float32) * 0.1

    # block_rows=80 -> TH=5 output rows per tile: exercises multi-tile stats
    # accumulation AND the tail-tile row mask (Hout=16 not a multiple of 5).
    out = conv2d_bn_activation(x, weight, gamma, beta, stride=1, dilation=1,
                               eps=0.01, activation='RE', block_rows=80)
    out = jax.block_until_ready(out)

    # Precision-matched pure-JAX reference (bf16-rounded conv operands, f32
    # accumulation / BN) of the same forward: conv -> train-mode BN -> ReLU.
    xb = x.astype(jnp.bfloat16).astype(jnp.float32)
    wb = weight.astype(jnp.bfloat16).astype(jnp.float32)
    p = (ksz - 1) // 2
    y = lax.conv_general_dilated(
        xb, wb, window_strides=(1, 1), padding=[(p, p), (p, p)],
        rhs_dilation=(1, 1), dimension_numbers=('NCHW', 'OIHW', 'NCHW'),
        precision=lax.Precision.HIGHEST)
    mean = y.mean(axis=(0, 2, 3), keepdims=True)
    var = ((y - mean) ** 2).mean(axis=(0, 2, 3), keepdims=True)
    ref = jnp.maximum(
        (y - mean) / jnp.sqrt(var + 0.01) * gamma[None, :, None, None]
        + beta[None, :, None, None], 0.0)

    assert out.shape == ref.shape == (N, Cout, H, W)
    err = float(jnp.max(jnp.abs(out - ref)))
    assert err < 5e-3, f"max abs error too large: {err}"

    print("KERNEL_OK")
</pallas_src>

<mosaic_0001>
module attributes {stable_mosaic.version = 11 : i64} {
  func.func @_stats_kernel(%arg0: i32, %arg1: i32, %arg2: memref<1x22x18x8xbf16, #tpu.memory_space<vmem>>, %arg3: memref<9x8x128xbf16, #tpu.memory_space<vmem>>, %arg4: memref<1x2x128xf32, #tpu.memory_space<vmem>>) attributes {dimension_semantics = [#tpu.dimension_semantics<parallel>, #tpu.dimension_semantics<arbitrary>], iteration_bounds = array<i64: 2, 4>, scalar_prefetch = 0 : i64, scratch_operands = 0 : i64, tpu.core_type = #tpu.core_type<tc>, window_params = [{transform_indices = @transform_0, window_bounds = array<i64: 1, 22, 18, 8>}, {pipeline_mode = #tpu.pipeline_mode<synchronous>, transform_indices = @transform_1, window_bounds = array<i64: 9, 8, 128>}, {transform_indices = @transform_2, window_bounds = array<i64: 1, 2, 128>}]} {
    %c5_i32 = arith.constant 5 : i32
    %0 = arith.muli %arg1, %c5_i32 : i32
    %c0_i32 = arith.constant 0 : i32
    %1 = arith.addi %0, %c0_i32 : i32
    %c0 = arith.constant 0 : index
    %2 = arith.index_cast %1 : i32 to index
    %c0_0 = arith.constant 0 : index
    %c0_1 = arith.constant 0 : index
    %3 = vector.load %arg2[%c0, %2, %c0_0, %c0_1] : memref<1x22x18x8xbf16, #tpu.memory_space<vmem>>, vector<1x5x16x8xbf16>
    %4 = vector.shape_cast %3 : vector<1x5x16x8xbf16> to vector<5x16x8xbf16>
    %5 = vector.shape_cast %4 : vector<5x16x8xbf16> to vector<80x8xbf16>
    %c0_2 = arith.constant 0 : index
    %c0_3 = arith.constant 0 : index
    %c0_4 = arith.constant 0 : index
    %6 = vector.load %arg3[%c0_2, %c0_3, %c0_4] : memref<9x8x128xbf16, #tpu.memory_space<vmem>>, vector<1x8x128xbf16>
    %7 = vector.shape_cast %6 : vector<1x8x128xbf16> to vector<8x128xbf16>
    %cst = arith.constant dense<0.000000e+00> : vector<80x128xf32>
    %8 = tpu.matmul %5, %7, %cst {dimension_numbers = #tpu.dot_dimension_numbers<[1], [0], [0], [1], [0, 0, 1, 1], [], []>} : vector<80x8xbf16>, vector<8x128xbf16>, vector<80x128xf32> -> vector<80x128xf32>
    %c0_i32_5 = arith.constant 0 : i32
    %9 = arith.addi %0, %c0_i32_5 : i32
    %c0_6 = arith.constant 0 : index
    %10 = arith.index_cast %9 : i32 to index
    %c1 = arith.constant 1 : index
    %c0_7 = arith.constant 0 : index
    %11 = vector.load %arg2[%c0_6, %10, %c1, %c0_7] : memref<1x22x18x8xbf16, #tpu.memory_space<vmem>>, vector<1x5x16x8xbf16>
    %12 = vector.shape_cast %11 : vector<1x5x16x8xbf16> to vector<5x16x8xbf16>
    %13 = vector.shape_cast %12 : vector<5x16x8xbf16> to vector<80x8xbf16>
    %c1_8 = arith.constant 1 : index
    %c0_9 = arith.constant 0 : index
    %c0_10 = arith.constant 0 : index
    %14 = vector.load %arg3[%c1_8, %c0_9, %c0_10] : memref<9x8x128xbf16, #tpu.memory_space<vmem>>, vector<1x8x128xbf16>
    %15 = vector.shape_cast %14 : vector<1x8x128xbf16> to vector<8x128xbf16>
    %cst_11 = arith.constant dense<0.000000e+00> : vector<80x128xf32>
    %16 = tpu.matmul %13, %15, %cst_11 {dimension_numbers = #tpu.dot_dimension_numbers<[1], [0], [0], [1], [0, 0, 1, 1], [], []>} : vector<80x8xbf16>, vector<8x128xbf16>, vector<80x128xf32> -> vector<80x128xf32>
    %17 = arith.addf %8, %16 : vector<80x128xf32>
    %c0_i32_12 = arith.constant 0 : i32
    %18 = arith.addi %0, %c0_i32_12 : i32
    %c0_13 = arith.constant 0 : index
    %19 = arith.index_cast %18 : i32 to index
    %c2 = arith.constant 2 : index
    %c0_14 = arith.constant 0 : index
    %20 = vector.load %arg2[%c0_13, %19, %c2, %c0_14] : memref<1x22x18x8xbf16, #tpu.memory_space<vmem>>, vector<1x5x16x8xbf16>
    %21 = vector.shape_cast %20 : vector<1x5x16x8xbf16> to vector<5x16x8xbf16>
    %22 = vector.shape_cast %21 : vector<5x16x8xbf16> to vector<80x8xbf16>
    %c2_15 = arith.constant 2 : index
    %c0_16 = arith.constant 0 : index
    %c0_17 = arith.constant 0 : index
    %23 = vector.load %arg3[%c2_15, %c0_16, %c0_17] : memref<9x8x128xbf16, #tpu.memory_space<vmem>>, vector<1x8x128xbf16>
    %24 = vector.shape_cast %23 : vector<1x8x128xbf16> to vector<8x128xbf16>
    %cst_18 = arith.constant dense<0.000000e+00> : vector<80x128xf32>
    %25 = tpu.matmul %22, %24, %cst_18 {dimension_numbers = #tpu.dot_dimension_numbers<[1], [0], [0], [1], [0, 0, 1, 1], [], []>} : vector<80x8xbf16>, vector<8x128xbf16>, vector<80x128xf32> -> vector<80x128xf32>
    %26 = arith.addf %17, %25 : vector<80x128xf32>
    %c1_i32 = arith.constant 1 : i32
    %27 = arith.addi %0, %c1_i32 : i32
    %c0_19 = arith.constant 0 : index
    %28 = arith.index_cast %27 : i32 to index
    %c0_20 = arith.constant 0 : index
    %c0_21 = arith.constant 0 : index
    %29 = vector.load %arg2[%c0_19, %28, %c0_20, %c0_21] : memref<1x22x18x8xbf16, #tpu.memory_space<vmem>>, vector<1x5x16x8xbf16>
    %30 = vector.shape_cast %29 : vector<1x5x16x8xbf16> to vector<5x16x8xbf16>
    %31 = vector.shape_cast %30 : vector<5x16x8xbf16> to vector<80x8xbf16>
    %c3 = arith.constant 3 : index
    %c0_22 = arith.constant 0 : index
    %c0_23 = arith.constant 0 : index
    %32 = vector.load %arg3[%c3, %c0_22, %c0_23] : memref<9x8x128xbf16, #tpu.memory_space<vmem>>, vector<1x8x128xbf16>
    %33 = vector.shape_cast %32 : vector<1x8x128xbf16> to vector<8x128xbf16>
    %cst_24 = arith.constant dense<0.000000e+00> : vector<80x128xf32>
    %34 = tpu.matmul %31, %33, %cst_24 {dimension_numbers = #tpu.dot_dimension_numbers<[1], [0], [0], [1], [0, 0, 1, 1], [], []>} : vector<80x8xbf16>, vector<8x128xbf16>, vector<80x128xf32> -> vector<80x128xf32>
    %35 = arith.addf %26, %34 : vector<80x128xf32>
    %c1_i32_25 = arith.constant 1 : i32
    %36 = arith.addi %0, %c1_i32_25 : i32
    %c0_26 = arith.constant 0 : index
    %37 = arith.index_cast %36 : i32 to index
    %c1_27 = arith.constant 1 : index
    %c0_28 = arith.constant 0 : index
    %38 = vector.load %arg2[%c0_26, %37, %c1_27, %c0_28] : memref<1x22x18x8xbf16, #tpu.memory_space<vmem>>, vector<1x5x16x8xbf16>
    %39 = vector.shape_cast %38 : vector<1x5x16x8xbf16> to vector<5x16x8xbf16>
    %40 = vector.shape_cast %39 : vector<5x16x8xbf16> to vector<80x8xbf16>
    %c4 = arith.constant 4 : index
    %c0_29 = arith.constant 0 : index
    %c0_30 = arith.constant 0 : index
    %41 = vector.load %arg3[%c4, %c0_29, %c0_30] : memref<9x8x128xbf16, #tpu.memory_space<vmem>>, vector<1x8x128xbf16>
    %42 = vector.shape_cast %41 : vector<1x8x128xbf16> to vector<8x128xbf16>
    %cst_31 = arith.constant dense<0.000000e+00> : vector<80x128xf32>
    %43 = tpu.matmul %40, %42, %cst_31 {dimension_numbers = #tpu.dot_dimension_numbers<[1], [0], [0], [1], [0, 0, 1, 1], [], []>} : vector<80x8xbf16>, vector<8x128xbf16>, vector<80x128xf32> -> vector<80x128xf32>
    %44 = arith.addf %35, %43 : vector<80x128xf32>
    %c1_i32_32 = arith.constant 1 : i32
    %45 = arith.addi %0, %c1_i32_32 : i32
    %c0_33 = arith.constant 0 : index
    %46 = arith.index_cast %45 : i32 to index
    %c2_34 = arith.constant 2 : index
    %c0_35 = arith.constant 0 : index
    %47 = vector.load %arg2[%c0_33, %46, %c2_34, %c0_35] : memref<1x22x18x8xbf16, #tpu.memory_space<vmem>>, vector<1x5x16x8xbf16>
    %48 = vector.shape_cast %47 : vector<1x5x16x8xbf16> to vector<5x16x8xbf16>
    %49 = vector.shape_cast %48 : vector<5x16x8xbf16> to vector<80x8xbf16>
    %c5 = arith.constant 5 : index
    %c0_36 = arith.constant 0 : index
    %c0_37 = arith.constant 0 : index
    %50 = vector.load %arg3[%c5, %c0_36, %c0_37] : memref<9x8x128xbf16, #tpu.memory_space<vmem>>, vector<1x8x128xbf16>
    %51 = vector.shape_cast %50 : vector<1x8x128xbf16> to vector<8x128xbf16>
    %cst_38 = arith.constant dense<0.000000e+00> : vector<80x128xf32>
    %52 = tpu.matmul %49, %51, %cst_38 {dimension_numbers = #tpu.dot_dimension_numbers<[1], [0], [0], [1], [0, 0, 1, 1], [], []>} : vector<80x8xbf16>, vector<8x128xbf16>, vector<80x128xf32> -> vector<80x128xf32>
    %53 = arith.addf %44, %52 : vector<80x128xf32>
    %c2_i32 = arith.constant 2 : i32
    %54 = arith.addi %0, %c2_i32 : i32
    %c0_39 = arith.constant 0 : index
    %55 = arith.index_cast %54 : i32 to index
    %c0_40 = arith.constant 0 : index
    %c0_41 = arith.constant 0 : index
    %56 = vector.load %arg2[%c0_39, %55, %c0_40, %c0_41] : memref<1x22x18x8xbf16, #tpu.memory_space<vmem>>, vector<1x5x16x8xbf16>
    %57 = vector.shape_cast %56 : vector<1x5x16x8xbf16> to vector<5x16x8xbf16>
    %58 = vector.shape_cast %57 : vector<5x16x8xbf16> to vector<80x8xbf16>
    %c6 = arith.constant 6 : index
    %c0_42 = arith.constant 0 : index
    %c0_43 = arith.constant 0 : index
    %59 = vector.load %arg3[%c6, %c0_42, %c0_43] : memref<9x8x128xbf16, #tpu.memory_space<vmem>>, vector<1x8x128xbf16>
    %60 = vector.shape_cast %59 : vector<1x8x128xbf16> to vector<8x128xbf16>
    %cst_44 = arith.constant dense<0.000000e+00> : vector<80x128xf32>
    %61 = tpu.matmul %58, %60, %cst_44 {dimension_numbers = #tpu.dot_dimension_numbers<[1], [0], [0], [1], [0, 0, 1, 1], [], []>} : vector<80x8xbf16>, vector<8x128xbf16>, vector<80x128xf32> -> vector<80x128xf32>
    %62 = arith.addf %53, %61 : vector<80x128xf32>
    %c2_i32_45 = arith.constant 2 : i32
    %63 = arith.addi %0, %c2_i32_45 : i32
    %c0_46 = arith.constant 0 : index
    %64 = arith.index_cast %63 : i32 to index
    %c1_47 = arith.constant 1 : index
    %c0_48 = arith.constant 0 : index
    %65 = vector.load %arg2[%c0_46, %64, %c1_47, %c0_48] : memref<1x22x18x8xbf16, #tpu.memory_space<vmem>>, vector<1x5x16x8xbf16>
    %66 = vector.shape_cast %65 : vector<1x5x16x8xbf16> to vector<5x16x8xbf16>
    %67 = vector.shape_cast %66 : vector<5x16x8xbf16> to vector<80x8xbf16>
    %c7 = arith.constant 7 : index
    %c0_49 = arith.constant 0 : index
    %c0_50 = arith.constant 0 : index
    %68 = vector.load %arg3[%c7, %c0_49, %c0_50] : memref<9x8x128xbf16, #tpu.memory_space<vmem>>, vector<1x8x128xbf16>
    %69 = vector.shape_cast %68 : vector<1x8x128xbf16> to vector<8x128xbf16>
    %cst_51 = arith.constant dense<0.000000e+00> : vector<80x128xf32>
    %70 = tpu.matmul %67, %69, %cst_51 {dimension_numbers = #tpu.dot_dimension_numbers<[1], [0], [0], [1], [0, 0, 1, 1], [], []>} : vector<80x8xbf16>, vector<8x128xbf16>, vector<80x128xf32> -> vector<80x128xf32>
    %71 = arith.addf %62, %70 : vector<80x128xf32>
    %c2_i32_52 = arith.constant 2 : i32
    %72 = arith.addi %0, %c2_i32_52 : i32
    %c0_53 = arith.constant 0 : index
    %73 = arith.index_cast %72 : i32 to index
    %c2_54 = arith.constant 2 : index
    %c0_55 = arith.constant 0 : index
    %74 = vector.load %arg2[%c0_53, %73, %c2_54, %c0_55] : memref<1x22x18x8xbf16, #tpu.memory_space<vmem>>, vector<1x5x16x8xbf16>
    %75 = vector.shape_cast %74 : vector<1x5x16x8xbf16> to vector<5x16x8xbf16>
    %76 = vector.shape_cast %75 : vector<5x16x8xbf16> to vector<80x8xbf16>
    %c8 = arith.constant 8 : index
    %c0_56 = arith.constant 0 : index
    %c0_57 = arith.constant 0 : index
    %77 = vector.load %arg3[%c8, %c0_56, %c0_57] : memref<9x8x128xbf16, #tpu.memory_space<vmem>>, vector<1x8x128xbf16>
    %78 = vector.shape_cast %77 : vector<1x8x128xbf16> to vector<8x128xbf16>
    %cst_58 = arith.constant dense<0.000000e+00> : vector<80x128xf32>
    %79 = tpu.matmul %76, %78, %cst_58 {dimension_numbers = #tpu.dot_dimension_numbers<[1], [0], [0], [1], [0, 0, 1, 1], [], []>} : vector<80x8xbf16>, vector<8x128xbf16>, vector<80x128xf32> -> vector<80x128xf32>
    %80 = arith.addf %71, %79 : vector<80x128xf32>
    %c5_i32_59 = arith.constant 5 : i32
    %81 = arith.muli %arg1, %c5_i32_59 : i32
    %c16_i32 = arith.constant 16 : i32
    %82 = arith.subi %c16_i32, %81 : i32
    %c0_i32_60 = arith.constant 0 : i32
    %c5_i32_61 = arith.constant 5 : i32
    %83 = arith.maxsi %c0_i32_60, %82 : i32
    %84 = arith.minsi %c5_i32_61, %83 : i32
    %c16_i32_62 = arith.constant 16 : i32
    %85 = arith.muli %84, %c16_i32_62 : i32
    %86 = tpu.iota {dimensions = array<i32: 0>} : vector<80x1xi32>
    %87 = vector.broadcast %85 : i32 to vector<80x1xi32>
    %88 = arith.cmpi slt, %86, %87 : vector<80x1xi32>
    %cst_63 = arith.constant 0.000000e+00 : f32
    %89 = vector.shape_cast %88 : vector<80x1xi1> to vector<80x1xi1>
    %90 = vector.broadcast %89 : vector<80x1xi1> to vector<80x128xi1>
    %91 = vector.broadcast %cst_63 : f32 to vector<80x128xf32>
    %92 = arith.select %90, %80, %91 : vector<80x128xi1>, vector<80x128xf32>
    %cst_64 = arith.constant dense<0.000000e+00> : vector<128xf32>
    %93 = vector.multi_reduction <add>, %92, %cst_64 [0] : vector<80x128xf32> to vector<128xf32>
    %94 = vector.shape_cast %93 : vector<128xf32> to vector<1x128xf32>
    %95 = arith.mulf %92, %92 : vector<80x128xf32>
    %cst_65 = arith.constant dense<0.000000e+00> : vector<128xf32>
    %96 = vector.multi_reduction <add>, %95, %cst_65 [0] : vector<80x128xf32> to vector<128xf32>
    %97 = vector.shape_cast %96 : vector<128xf32> to vector<1x128xf32>
    %c0_i32_66 = arith.constant 0 : i32
    %98 = arith.cmpi eq, %arg1, %c0_i32_66 : i32
    %99 = arith.extui %98 : i1 to i32
    %c0_i32_67 = arith.constant 0 : i32
    %100 = arith.cmpi ne, %99, %c0_i32_67 : i32
    scf.if %100 {
      %cst_74 = arith.constant 0.000000e+00 : f32
      %108 = vector.broadcast %cst_74 : f32 to vector<2x128xf32>
      %c0_75 = arith.constant 0 : index
      %c0_76 = arith.constant 0 : index
      %c0_77 = arith.constant 0 : index
      %109 = vector.load %arg4[%c0_75, %c0_76, %c0_77] : memref<1x2x128xf32, #tpu.memory_space<vmem>>, vector<1x2x128xf32>
      %110 = vector.shape_cast %109 : vector<1x2x128xf32> to vector<2x128xf32>
      %111 = vector.shape_cast %108 : vector<2x128xf32> to vector<1x2x128xf32>
      tpu.vector_store %arg4[%c0_75, %c0_76, %c0_77], %111 {strides = array<i32>} : memref<1x2x128xf32, #tpu.memory_space<vmem>>, vector<1x2x128xf32>,
    } else {
    }
    %c0_68 = arith.constant 0 : index
    %c0_69 = arith.constant 0 : index
    %c0_70 = arith.constant 0 : index
    %101 = vector.load %arg4[%c0_68, %c0_69, %c0_70] : memref<1x2x128xf32, #tpu.memory_space<vmem>>, vector<1x2x128xf32>
    %102 = vector.shape_cast %101 : vector<1x2x128xf32> to vector<2x128xf32>
    %103 = tpu.concatenate %94, %97 in 0 : vector<1x128xf32>, vector<1x128xf32> -> vector<2x128xf32>
    %104 = arith.addf %102, %103 : vector<2x128xf32>
    %c0_71 = arith.constant 0 : index
    %c0_72 = arith.constant 0 : index
    %c0_73 = arith.constant 0 : index
    %105 = vector.load %arg4[%c0_71, %c0_72, %c0_73] : memref<1x2x128xf32, #tpu.memory_space<vmem>>, vector<1x2x128xf32>
    %106 = vector.shape_cast %105 : vector<1x2x128xf32> to vector<2x128xf32>
    %107 = vector.shape_cast %104 : vector<2x128xf32> to vector<1x2x128xf32>
    tpu.vector_store %arg4[%c0_71, %c0_72, %c0_73], %107 {strides = array<i32>} : memref<1x2x128xf32, #tpu.memory_space<vmem>>, vector<1x2x128xf32>,
    return
  }
  func.func @transform_0(%arg0: i32, %arg1: i32) -> (i32, i32, i32, i32) {
    %c0_i32 = arith.constant 0 : i32
    %c0_i32_0 = arith.constant 0 : i32
    %c0_i32_1 = arith.constant 0 : i32
    %c0_i32_2 = arith.constant 0 : i32
    return %arg0, %c0_i32, %c0_i32_0, %c0_i32_1 : i32, i32, i32, i32
  }
  func.func @transform_1(%arg0: i32, %arg1: i32) -> (i32, i32, i32) {
    %c0_i32 = arith.constant 0 : i32
    %c0_i32_0 = arith.constant 0 : i32
    %c0_i32_1 = arith.constant 0 : i32
    %c0_i32_2 = arith.constant 0 : i32
    return %c0_i32, %c0_i32_0, %c0_i32_1 : i32, i32, i32
  }
  func.func @transform_2(%arg0: i32, %arg1: i32) -> (i32, i32, i32) {
    %c0_i32 = arith.constant 0 : i32
    %c0_i32_0 = arith.constant 0 : i32
    %c0_i32_1 = arith.constant 0 : i32
    return %arg0, %c0_i32, %c0_i32_0 : i32, i32, i32
  }
}

</mosaic_0001>

<bundles_post_ra>
// kernel: tpu_custom_call.1
= control target key start
LH: loop header
LB: loop body
LE: loop exit
PB: predicated region body
PF: predicated region fallthrough
CT: control target
= control target key end

     0   :  { %7 = vsyncpa [#allocation3], 0  ;;  %s3448_s0 = inlined_call_operand.vmem [shape: bf16[2,22,18,8], index: 0, kind: input, shape index: {}]   ;;  %s3449_s1 = inlined_call_operand.vmem [shape: bf16[9,8,128], index: 1, kind: input, shape index: {}]   ;;  %s3450_s2 = inlined_call_operand.hbm [shape: f32[2,2,128], index: 2, kind: output, shape index: {}]  }
   0x1   :  { %9 = vsyncpa [#allocation3 + $0x1], 0  ;;  %s2688_s9 = smov 0   ;;  %s2690_s10 = smov 0  }
   0x2   :  { %s2692_s11 = smov 0   ;;  %s2694_s12 = smov 0  }
   0x3   :  { %s2696_s13 = smov 0   ;;  %s2698_s14 = smov 0  }
   0x4   :  { %s2700_s15 = smov 0   ;;  %s2702_s16 = smov 0  }
   0x5 LB: > { %s2033_s17 = sadd.s32 4294967295, %s2667_s16   ;;  %s2034_s18 = sadd.s32 4294967294, %s2667_s16   ;;  %s2667_s16 = sphi %s2702_s16, %s15_s16   ;;  %s2663_s15 = sphi %s2700_s15, %s3463_s15   ;;  %s2659_s14 = sphi %s2698_s14, %s3462_s14   ;;  %s2655_s13 = sphi %s2696_s13, %s3461_s13   ;;  %s2651_s12 = sphi %s2694_s12, %s3460_s12   ;;  %s2647_s11 = sphi %s2692_s11, %s3459_s11   ;;  %s2643_s10 = sphi %s2690_s10, %s3458_s10   ;;  %s2639_s9 = sphi %s2688_s9, %s3457_s9  }
   0x6   : > { %s24_s19 = sadd.s32 1, %s2659_s14  ;;  %s27_s20 = sadd.s32 1, %s2663_s15 }
   0x7   : > { %p25_p0 = scmp.ge.s32.totalorder %s24_s19, 4  ;;  %p91_p1 = scmp.ne.s32.totalorder %s2647_s11, %s2643_s10 }
   0x8   : > { %p92_p2 = scmp.eq.s32.totalorder %s2033_s17, 7  ;;  %p97_p4 = scmp.ne.s32.totalorder %s2643_s10, %s2639_s9 }
   0x9   : > { %s3465_s19 = smov (%p25_p0, %s24_s19), 0  ;;  %s3467_s20 = smov (!%p25_p0, %s27_s20), %s2663_s15 }
   0xa   : > { %p2737_p3 = por %p92_p2, %p91_p1  ;;  %p29_p5 = scmp.ge.s32.totalorder %s3467_s20, 2 }
   0xb   : > { %p98_p6 = scmp.eq.s32.totalorder %s2034_s18, 7  ;;  %p2037_p7 = scmp.ge.s32.totalorder %s2667_s16, 1 }
   0xc   : > { %p127_p8 = scmp.lt.s32.totalorder %s2667_s16, 9  ;;  %s3469_s20 = smov (%p29_p5, %s3467_s20), 0 }
   0xd   : > { %p2747_p9 = por %p98_p6, %p97_p4  ;;  %s78_s23 = ssub.s32 %s2663_s15, %s3469_s20 }
   0xe   : > { %p128_p10 = pnand %p2037_p7, %p127_p8  ;;  %s81_s24 = sadd.s32 1, %s2647_s11 }
   0xf   : > { %p79_p11 = scmp.eq.s32.totalorder %s78_s23, 0  ;;  %s146_s26 = sand.u32 (!%p128_p10), 1, %s2643_s10  }
  0x10   : > { %131 = sbr.rel (%p128_p10) target bundleno = 455 (0x1c7), region = 28  ;;  %s2763_s29 = sshll.u32 (!%p128_p10), %s146_s26, 1 }
  0x11   : > { %s2755_s25 = scalar_select %p79_p11, %s2647_s11, %s81_s24  }
  0x12   : > { %p149_p12 = scmp.lt.s32.totalorder (!%p128_p10), %s2655_s13, 1  ;;  %s2228_s3 = smul.u32 (!%p128_p10), 60, %s2651_s12 }
  0x13   : > { %p2223_p1 = scmp.ne.s32.totalorder (!%p128_p10), %s2651_s12, 0 }
  0x15   : > { %v2042_v0 = vld [vmem:[%s3449_s1 + $0x4] sm:$0xf]  ;;  %vm331_vm0 = vcmask 1043456   ;;  %v2669_v1 = vmov 0.0   ;;  %vm2670_vm1 = vmmov 0   ;;  %s150_s30 = scalar_select %p149_p12, %s2655_s13, 1 }
  0x16   : > { %2285 = vmatprep.subr.bf16.mxu0 %v2669_v1  ;;  %2483 = vmatprep.subr.bf16.mxu1 %v2669_v1  ;;  %v333_v2 = vsel %vm331_vm0, %v2042_v0, 0  ;;  %vm175_vm2 = vsmask.f32 3328  ;;  %vm176_vm3 = vsmask.f32 7440  ;;  %vm315_vm4 = vcmask 64512  }
  0x17   : > { %2286 = vmatpush3.bf16.msra.mxu0 %v333_v2  ;;  %2484 = vmatpush3.bf16.msra.mxu1 %v333_v2  ;;  %s2485_s4 = smul.u32 264, %s150_s30  ;;  %v2068_v3 = vld [vmem:[%s3449_s1 + $0x8] sm:$0xf]  ;;  %v169_v4 = vld [vmem:[%s3449_s1] sm:$0xf]  ;;  %vm2828_vm5 = vmor %vm175_vm2, %vm176_vm3  ;;  %vm539_vm6 = vcmask 1042432  }
  0x18   : > { %2287 = vmatprep.mubr.msk.bf16.mxu0 %vm2670_vm1, %v2669_v1  ;;  %2299 = vmatprep.mubr.msk.bf16.mxu1 %vm2670_vm1, %v2669_v1  ;;  %v610_v16 = vsel %vm331_vm0, %v2068_v3, 0  ;;  %v2811_v17 = vsel %vm331_vm0, %v169_v4, 0  ;;  %vm540_vm7 = vcmask 1046532  }
  0x19   : > { %2329 = vmatprep.subr.bf16.mxu0 %v2669_v1  ;;  %2307 = vmatprep.subr.bf16.mxu1 %v2669_v1  ;;  %s153_s7 = scalar_lea.vmem %s3448_s0, %s2485_s4  ;;  %vm2904_vm8 = vmor %vm539_vm6, %vm540_vm7 }
  0x1a   : > { %s2780_s8 = scalar_lea.vmem %s153_s7, %s2228_s3  ;;  %s148_s3 = scalar_lea.vmem [#allocation2], %s2763_s29 }
  0x1b   : > { %v2789_v5 = vld [vmem:[%s2780_s8] sm:$0xf]  ;;  %v2792_v6 = vld [vmem:[%s2780_s8 + $0x4] sm:$0xf]  ;;  %v2795_v7 = vld [vmem:[%s2780_s8 + $0x8] sm:$0x1] }
  0x1c   : > { %v179_v8 = vshrl.u32 %v2789_v5, 16  ;;  %v182_v9 = vshll.u32 %v2789_v5, 16  ;;  %v188_v10 = vshll.u32 %v2792_v6, 16  ;;  %v192_v11 = vshrl.u32 %v2792_v6, 16  ;;  %v2802_v12 = vld [vmem:[%s2780_s8 + $0x24] sm:$0xf] }
  0x1d   : > { %v198_v13 = vshll.u32 %v2795_v7, 16  ;;  %v2806_v14 = vld [vmem:[%s2780_s8 + $0x28] sm:$0xf]  ;;  %v251_v15 = vshrl.u32 %v2802_v12, 16  ;;  %v2814_v22 = vld [vmem:[%s2780_s8 + $0x2c] sm:$0x1] }
  0x1e   : > { %v181_v18 = vrot.slane %v179_v8, 4  ;;  %v184_v19 = vrot.slane %v182_v9, 5  ;;  %v190_v20 = vrot.slane %v188_v10, 5  ;;  %v194_v21 = vrot.slane %v192_v11, 4  ;;  %v2819_v27 = vld [vmem:[%s2780_s8 + $0xc] sm:$0xf] }
  0x1f   : > { %v200_v23 = vrot.slane %v198_v13, 5  ;;  %v253_v24 = vrot.slane %v251_v15, 4  ;;  %v254_v25 = vshll.u32 %v2802_v12, 16  ;;  %v260_v26 = vshll.u32 %v2806_v14, 16  ;;  %v2824_v32 = vld [vmem:[%s2780_s8 + $0x10] sm:$0xf] }
  0x20   : > { %v185_v28 = vor.u32 %v184_v19, %v181_v18  ;;  %v195_v29 = vor.u32 %v194_v21, %v190_v20  ;;  %v264_v30 = vshrl.u32 %v2806_v14, 16  ;;  %v270_v31 = vshll.u32 %v2814_v22, 16  ;;  %v2835_v42 = vld [vmem:[%s2780_s8 + $0x14] sm:$0x1]  ;;  %v2839_v47 = vld [vmem:[%s2780_s8 + $0x30] sm:$0xf] }
  0x21   : > { %v256_v34 = vrot.slane %v254_v25, 5  ;;  %v262_v35 = vrot.slane %v260_v26, 5  ;;  %v203_v36 = vshrl.u32 %v2819_v27, 16  ;;  %v206_v37 = vshll.u32 %v2819_v27, 16  ;;  %v2847_v52 = vld [vmem:[%s2780_s8 + $0x34] sm:$0xf] }
  0x22   : > { %v186_v38 = vrot.slane %v185_v28, 4  ;;  %v196_v39 = vrot.slane %v195_v29, 4  ;;  %v266_v40 = vrot.slane %v264_v30, 4  ;;  %v272_v41 = vrot.slane %v270_v31, 5  ;;  %v2851_v60 = vld [vmem:[%s2780_s8 + $0x38] sm:$0x1] }
  0x23   : > { %v257_v43 = vor.u32 %v256_v34, %v253_v24  ;;  %v205_v44 = vrot.slane %v203_v36, 4  ;;  %v208_v45 = vrot.slane %v206_v37, 5  ;;  %v212_v46 = vshll.u32 %v2824_v32, 16  ;;  %v2860_v3 = vld [vmem:[%s2780_s8 + $0x18] sm:$0xf] }
  0x24   : > { %v191_v48 = vsel %vm2828_vm5, %v186_v38, %v190_v20  ;;  %v201_v49 = vsel %vm2828_vm5, %v196_v39, %v200_v23  ;;  %v267_v50 = vor.u32 %v266_v40, %v262_v35  ;;  %v216_v51 = vshrl.u32 %v2824_v32, 16  ;;  %v2867_v11 = vld [vmem:[%s2780_s8 + $0x1c] sm:$0xf]  ;;  %v2872_v20 = vld [vmem:[%s2780_s8 + $0x20] sm:$0x1] }
  0x25   : > { %v2043_v53 = vcombine.low %v191_v48, %v201_v49  ;;  %v258_v54 = vrot.slane %v257_v43, 4  ;;  %v209_v55 = vor.u32 %v208_v45, %v205_v44  ;;  %v214_v56 = vrot.slane %v212_v46, 5 }
  0x26   : > { %v268_v57 = vrot.slane %v267_v50, 4  ;;  %v218_v58 = vrot.slane %v216_v51, 4  ;;  %v222_v59 = vshll.u32 %v2835_v42, 16  ;;  %v275_v61 = vshrl.u32 %v2839_v47, 16  ;;  %v524_v51 = vld [vmem:[%s2780_s8] sm:$0xe] }
  0x27   : > { %2288 = vmatmul.mubr.msk.bf16.vlgmr.msra.gmra.mxu0 %vm315_vm4, %v2043_v53  ;;  %v263_v62 = vsel %vm2828_vm5, %v258_v54, %v262_v35  ;;  %v210_v63 = vrot.slane %v209_v55, 4  ;;  %v278_v0 = vshll.u32 %v2839_v47, 16  ;;  %v284_v2 = vshll.u32 %v2847_v52, 16 }
  0x28   : > { %v273_v4 = vsel %vm2828_vm5, %v268_v57, %v272_v41  ;;  %2330 = vmatpush3.bf16.msra.mxu0 %v610_v16  ;;  %2291 = vmatprep.mubr.msk.bf16.mxu0 %vm2670_vm1, %v2669_v1  ;;  %v219_v8 = vor.u32 %v218_v58, %v214_v56  ;;  %v224_v9 = vrot.slane %v222_v59, 5  ;;  %v277_v10 = vrot.slane %v275_v61, 4 }
  0x29   : > { %v2046_v13 = vcombine.low %v263_v62, %v273_v4  ;;  %v215_v15 = vsel %vm2828_vm5, %v210_v63, %v214_v56  ;;  %v280_v18 = vrot.slane %v278_v0, 5  ;;  %v286_v19 = vrot.slane %v284_v2, 5  ;;  %2373 = vmatprep.subr.bf16.mxu0 %v2669_v1 }
  0x2a   : > { %v220_v21 = vrot.slane %v219_v8, 4  ;;  %v288_v16 = vshrl.u32 %v2847_v52, 16  ;;  %v294_v23 = vshll.u32 %v2851_v60, 16  ;;  %v227_v24 = vshrl.u32 %v2860_v3, 16 }
  0x2b   : > { %2300 = vmatmul.mubr.msk.bf16.vlgmr.msra.gmra.mxu1 %vm315_vm4, %v2046_v13  ;;  %v281_v25 = vor.u32 %v280_v18, %v277_v10  ;;  %v230_v26 = vshll.u32 %v2860_v3, 16  ;;  %v236_v28 = vshll.u32 %v2867_v11, 16  ;;  %v240_v29 = vshrl.u32 %v2867_v11, 16  ;;  %v2116_v10 = vld [vmem:[%s3449_s1 + $0x10] sm:$0xf] }
  0x2c   : > { %2308 = vmatpush3.bf16.msra.mxu1 %v2811_v17  ;;  %2303 = vmatprep.mubr.msk.bf16.mxu1 %vm2670_vm1, %v2669_v1  ;;  %v225_v30 = vsel %vm2828_vm5, %v220_v21, %v224_v9  ;;  %v290_v31 = vrot.slane %v288_v16, 4  ;;  %v229_v34 = vrot.slane %v227_v24, 4  ;;  %v296_v40 = vrot.slane %v294_v23, 5  ;;  %v525_v9 = vld [vmem:[%s2780_s8 + $0xc] sm:$0xe] }
  0x2d   : > { %v2044_v35 = vcombine.low %v215_v15, %v225_v30  ;;  %v282_v36 = vrot.slane %v281_v25, 4  ;;  %v232_v37 = vrot.slane %v230_v26, 5  ;;  %v238_v38 = vrot.slane %v236_v28, 5  ;;  %2351 = vmatprep.subr.bf16.mxu1 %v2669_v1  ;;  %v526_v24 = vld [vmem:[%s2780_s8 + $0x18] sm:$0xe] }
  0x2e   : > { %v291_v39 = vor.u32 %v290_v31, %v286_v19  ;;  %v242_v41 = vrot.slane %v240_v29, 4  ;;  %v246_v17 = vshll.u32 %v2872_v20, 16  ;;  %v544_v43 = vrot.slane %v2792_v6, 5  ;;  %v527_v31 = vld [vmem:[%s2780_s8 + $0x24] sm:$0xe] }
  0x2f   : > { %2292 = vmatmul.mubr.msk.bf16.gmra.mxu0 %vm315_vm4, %v2044_v35  ;;  %v233_v44 = vor.u32 %v232_v37, %v229_v34  ;;  %v287_v45 = vsel %vm2828_vm5, %v282_v36, %v286_v19  ;;  %v547_v55 = vrot.slane %v2795_v7, 5  ;;  %v2063_v59 = vrot.slane %v524_v51, 9  ;;  %v2090_v7 = vld [vmem:[%s3449_s1 + $0xc] sm:$0xf] }
  0x30   : > { %v292_v46 = vrot.slane %v291_v39, 4  ;;  %2295 = vmatprep.mubr.msk.bf16.mxu0 %vm2670_vm1, %v2669_v1  ;;  %v243_v48 = vor.u32 %v242_v41, %v238_v38  ;;  %v248_v49 = vrot.slane %v246_v17, 5  ;;  %v546_v61 = vrot.slane %v544_v43, 4  ;;  %v2965_v39 = vld [vmem:[%s2780_s8 + $0x10] sm:$0xf] }
  0x31   : > { %v234_v50 = vrot.slane %v233_v44, 4  ;;  %v545_v0 = vsel %vm2904_vm8, %v2063_v59, %v544_v43  ;;  %v551_v4 = vrot.slane %v2824_v32, 5  ;;  %v2053_v8 = vcombine.low %v2789_v5, %v2792_v6 }
  0x32   : > { %v297_v53 = vsel %vm2828_vm5, %v292_v46, %v296_v40  ;;  %v244_v54 = vrot.slane %v243_v48, 4  ;;  %v548_v2 = vsel %vm2904_vm8, %v546_v61, %v547_v55  ;;  %v752_v13 = vsel %vm331_vm0, %v2090_v7, 0  ;;  %v528_v40 = vld [vmem:[%s2780_s8 + $0x30] sm:$0xe] }
  0x33   : > { %v2047_v56 = vcombine.low %v287_v45, %v297_v53  ;;  %v239_v57 = vsel %vm2828_vm5, %v234_v50, %v238_v38  ;;  %v2069_v15 = vcombine.low %v545_v0, %v548_v2  ;;  %v2064_v18 = vrot.slane %v525_v9, 9  ;;  %v2101_v38 = vld [vmem:[%s2780_s8 + $0xc] sm:$0xf] }
  0x34   : > { %v249_v58 = vsel %vm2828_vm5, %v244_v54, %v248_v49  ;;  %v553_v19 = vrot.slane %v551_v4, 4  ;;  %v554_v21 = vrot.slane %v2835_v42, 5  ;;  %v1005_v16 = vsel %vm331_vm0, %v2116_v10, 0 }
  0x35   : > { %2304 = vmatmul.mubr.msk.bf16.gmra.mxu1 %vm315_vm4, %v2047_v56  ;;  %v2045_v62 = vcombine.low %v239_v57, %v249_v58  ;;  %v552_v5 = vsel %vm2904_vm8, %v2064_v18, %v551_v4  ;;  %v558_v42 = vrot.slane %v2867_v11, 5  ;;  %v2054_v23 = vcombine.low %v2819_v27, %v2824_v32  ;;  %v2104_v56 = vld [vmem:[%s2780_s8 + $0x18] sm:$0xf]  ;;  %v2986_v57 = vld [vmem:[%s2780_s8 + $0x14] sm:$0x1] }
  0x36   : > { %2309 = vmatprep.mubr.msk.bf16.mxu1 %vm2670_vm1, %v2669_v1  ;;  %v555_v6 = vsel %vm2904_vm8, %v553_v19, %v554_v21  ;;  %v2065_v26 = vrot.slane %v526_v24, 9  ;;  %v561_v29 = vrot.slane %v2872_v20, 5  ;;  %v565_v20 = vrot.slane %v2806_v14, 5  ;;  %v2989_v58 = vld [vmem:[%s2780_s8 + $0x1c] sm:$0xf] }
  0x37   : > { %2296 = vmatmul.mubr.msk.bf16.gmra.mxu0 %vm315_vm4, %v2045_v62  ;;  %v2070_v25 = vcombine.low %v552_v5, %v555_v6  ;;  %v560_v28 = vrot.slane %v558_v42, 4  ;;  %v2055_v30 = vcombine.low %v2860_v3, %v2867_v11  ;;  %v2066_v35 = vrot.slane %v527_v31, 9  ;;  %v3007_v21 = vld [vmem:[%s2780_s8 + $0x20] sm:$0x1]  ;;  %v3011_v6 = vld [vmem:[%s2780_s8 + $0x28] sm:$0xf] }
  0x38   : > { %2331 = vmatprep.mubr.msk.bf16.mxu0 %vm2670_vm1, %v2669_v1  ;;  %v559_v27 = vsel %vm2904_vm8, %v2065_v26, %v558_v42  ;;  %v567_v36 = vrot.slane %v565_v20, 4  ;;  %v568_v37 = vrot.slane %v2814_v22, 5  ;;  %v572_v41 = vrot.slane %v2847_v52, 5 }
  0x39   : > { %v562_v32 = vsel %vm2904_vm8, %v560_v28, %v561_v29  ;;  %v853_v3 = vshrl.u32 %v2101_v38, 16  ;;  %v856_v11 = vshll.u32 %v2101_v38, 16  ;;  %v566_v22 = vsel %vm2904_vm8, %v2066_v35, %v565_v20  ;;  %v2159_v20 = vld [vmem:[%s3449_s1 + $0x18] sm:$0xf] }
  0x3a   : > { %v2071_v34 = vcombine.low %v559_v27, %v562_v32  ;;  %v569_v17 = vsel %vm2904_vm8, %v567_v36, %v568_v37  ;;  %v862_v43 = vshll.u32 %v2965_v39, 16  ;;  %v866_v44 = vshrl.u32 %v2965_v39, 16  ;;  %v2565_v32 = vld [vmem:[%s2780_s8 + $0xc] sm:$0xff]  }
  0x3b   : > { %v2056_v45 = vcombine.low %v2802_v12, %v2806_v14  ;;  %v2067_v46 = vrot.slane %v528_v40, 9  ;;  %v575_v48 = vrot.slane %v2851_v60, 5  ;;  %v2072_v49 = vcombine.low %v566_v22, %v569_v17  ;;  %v3034_v37 = vld [vmem:[%s2780_s8 + $0x2c] sm:$0x1]  ;;  %v3040_v17 = vld [vmem:[%s2780_s8 + $0x34] sm:$0xf] }
  0x3c   : > { %v574_v50 = vrot.slane %v572_v41, 4  ;;  %v855_v51 = vrot.slane %v853_v3, 4  ;;  %v858_v53 = vrot.slane %v856_v11, 5  ;;  %v864_v54 = vrot.slane %v862_v43, 5  ;;  %v2110_v11 = vld [vmem:[%s2780_s8 + $0x30] sm:$0xf] }
  0x3d   : > { %2310 = vmatmul.mubr.msk.bf16.vlgmr.msra.gmra.mxu1 %vm315_vm4, %v2053_v8  ;;  %v868_v55 = vrot.slane %v866_v44, 4  ;;  %v573_v12 = vsel %vm2904_vm8, %v2067_v46, %v572_v41  ;;  %v877_v59 = vshrl.u32 %v2104_v56, 16  ;;  %v880_v61 = vshll.u32 %v2104_v56, 16 }
  0x3e   : > { %2352 = vmatpush3.bf16.msra.mxu1 %v752_v13  ;;  %2313 = vmatprep.mubr.msk.bf16.mxu1 %vm2670_vm1, %v2669_v1  ;;  %v576_v14 = vsel %vm2904_vm8, %v574_v50, %v575_v48  ;;  %v859_v60 = vor.u32 %v858_v53, %v855_v51  ;;  %v872_v7 = vshll.u32 %v2986_v57, 16  ;;  %v886_v0 = vshll.u32 %v2989_v58, 16 }
  0x3f   : > { %2332 = vmatmul.mubr.msk.bf16.vlgmr.msra.gmra.mxu0 %vm315_vm4, %v2069_v15  ;;  %2395 = vmatprep.subr.bf16.mxu1 %v2669_v1  ;;  %v869_v62 = vor.u32 %v868_v55, %v864_v54  ;;  %v890_v2 = vshrl.u32 %v2989_v58, 16  ;;  %v2057_v4 = vcombine.low %v2839_v47, %v2847_v52  ;;  %v2073_v8 = vcombine.low %v573_v12, %v576_v14  ;;  %v2107_v15 = vld [vmem:[%s2780_s8 + $0x24] sm:$0xf]  ;;  %v3058_v12 = vld [vmem:[%s2780_s8 + $0x38] sm:$0x1] }
  0x40   : > { %2374 = vmatpush3.bf16.msra.mxu0 %v1005_v16  ;;  %2335 = vmatprep.mubr.msk.bf16.mxu0 %vm2670_vm1, %v2669_v1  ;;  %v860_v9 = vrot.slane %v859_v60, 4  ;;  %v879_v10 = vrot.slane %v877_v59, 4  ;;  %v882_v13 = vrot.slane %v880_v61, 5  ;;  %v874_v19 = vrot.slane %v872_v7, 5 }
  0x41   : > { %2417 = vmatprep.subr.bf16.mxu0 %v2669_v1  ;;  %v870_v18 = vrot.slane %v869_v62, 4  ;;  %v888_v16 = vrot.slane %v886_v0, 5  ;;  %v892_v5 = vrot.slane %v890_v2, 4  ;;  %v901_v47 = vshrl.u32 %v2107_v15, 16  ;;  %v2113_v0 = vld [vmem:[%s2780_s8 + $0x3c] sm:$0xf] }
  0x42   : > { %v904_v52 = vshll.u32 %v2107_v15, 16  ;;  %v865_v42 = vsel %vm2828_vm5, %v860_v9, %v864_v54  ;;  %v896_v24 = vshll.u32 %v3007_v21, 16  ;;  %v910_v29 = vshll.u32 %v3011_v6, 16  ;;  %v2566_v54 = vld [vmem:[%s2780_s8 + $0x18] sm:$0xff]   ;;  %v3063_v2 = vld [vmem:[%s2780_s8 + $0x40] sm:$0xf] }
  0x43   : > { %v875_v26 = vsel %vm2828_vm5, %v870_v18, %v874_v19  ;;  %v893_v28 = vor.u32 %v892_v5, %v888_v16  ;;  %v914_v27 = vshrl.u32 %v3011_v6, 16  ;;  %v1320_v22 = vsel %vm331_vm0, %v2159_v20, 0  ;;  %v2567_v5 = vld [vmem:[%s2780_s8 + $0x24] sm:$0xff]  }
  0x44   : > { %v906_v31 = vrot.slane %v904_v52, 5  ;;  %v2117_v35 = vcombine.low %v865_v42, %v875_v26  ;;  %v898_v40 = vrot.slane %v896_v24, 5  ;;  %v912_v41 = vrot.slane %v910_v29, 5 }
  0x45   : > { %2314 = vmatmul.mubr.msk.bf16.gmra.mxu1 %vm315_vm4, %v2054_v23  ;;  %v883_v23 = vor.u32 %v882_v13, %v879_v10  ;;  %v894_v38 = vrot.slane %v893_v28, 4  ;;  %v916_v3 = vrot.slane %v914_v27, 4  ;;  %v925_v46 = vshrl.u32 %v2110_v11, 16 }
  0x46   : > { %2317 = vmatprep.mubr.msk.bf16.mxu1 %vm2670_vm1, %v2669_v1  ;;  %v928_v48 = vshll.u32 %v2110_v11, 16  ;;  %v934_v51 = vshll.u32 %v3040_v17, 16  ;;  %v938_v53 = vshrl.u32 %v3040_v17, 16  ;;  %v944_v9 = vshll.u32 %v3058_v12, 16 }
  0x47   : > { %2336 = vmatmul.mubr.msk.bf16.gmra.mxu0 %vm315_vm4, %v2070_v25  ;;  %v2137_v25 = vld [vmem:[%s3449_s1 + $0x14] sm:$0xf]  ;;  %v884_v36 = vrot.slane %v883_v23, 4  ;;  %v917_v50 = vor.u32 %v916_v3, %v912_v41  ;;  %v927_v14 = vrot.slane %v925_v46, 4  ;;  %v949_v10 = vshrl.u32 %v2113_v0, 16 }
  0x48   : > { %2339 = vmatprep.mubr.msk.bf16.mxu0 %vm2670_vm1, %v2669_v1  ;;  %v930_v60 = vrot.slane %v928_v48, 5  ;;  %v936_v62 = vrot.slane %v934_v51, 5  ;;  %v940_v7 = vrot.slane %v938_v53, 4  ;;  %v952_v13 = vshll.u32 %v2113_v0, 16  ;;  %v2127_v3 = vld [vmem:[%s2780_s8 + $0xc] sm:$0xe] }
  0x49   : > { %v889_v44 = vsel %vm2828_vm5, %v884_v36, %v888_v16  ;;  %v918_v59 = vrot.slane %v917_v50, 4  ;;  %v958_v19 = vshll.u32 %v3063_v2, 16  ;;  %v962_v16 = vshrl.u32 %v3063_v2, 16  ;;  %v2128_v51 = vld [vmem:[%s2780_s8 + $0x18] sm:$0xe] }
  0x4a   : > { %v941_v18 = vor.u32 %v940_v7, %v936_v62  ;;  %v946_v42 = vrot.slane %v944_v9, 5  ;;  %v951_v23 = vrot.slane %v949_v10, 4  ;;  %v954_v26 = vrot.slane %v952_v13, 5  ;;  %v2129_v7 = vld [vmem:[%s2780_s8 + $0x24] sm:$0xe] }
  0x4b   : > { %v960_v28 = vrot.slane %v958_v19, 5  ;;  %v964_v29 = vrot.slane %v962_v16, 4  ;;  %v1115_v46 = vrot.slane %v2986_v57, 5  ;;  %v1119_v50 = vrot.slane %v2989_v58, 5  ;;  %v2185_v57 = vld [vmem:[%s3449_s1 + $0x1c] sm:$0xf] }
  0x4c   : > { %v942_v24 = vrot.slane %v941_v18, 4  ;;  %v2206_v58 = vld [vmem:[%s3449_s1 + $0x20] sm:$0xf]  ;;  %v1129_v9 = vrot.slane %v3034_v37, 5  ;;  %v2571_v10 = vld [vmem:[%s2780_s8 + $0x24] sm:$0xff]  }
  0x4d   : > { %2318 = vmatmul.mubr.msk.bf16.gmra.mxu1 %vm315_vm4, %v2055_v30  ;;  %v903_v30 = vrot.slane %v901_v47, 4  ;;  %v2130_v18 = vld [vmem:[%s2780_s8 + $0x30] sm:$0xe] }
  0x4e   : > { %2321 = vmatprep.mubr.msk.bf16.mxu1 %vm2670_vm1, %v2669_v1  ;;  %v947_v20 = vsel %vm2828_vm5, %v942_v24, %v946_v42  ;;  %v2135_v19 = vrot.slane %v2130_v18, 9  ;;  %v3159_v42 = vld [vmem:[%s2780_s8 + $0x1c] sm:$0xf] }
  0x4f   : > { %2340 = vmatmul.mubr.msk.bf16.gmra.mxu0 %vm315_vm4, %v2071_v34  ;;  %v1178_v34 = vsel %vm331_vm0, %v2137_v25, 0  ;;  %v907_v43 = vor.u32 %v906_v31, %v903_v30  ;;  %v3079_v25 = vld [vmem:[%s2780_s8 + $0x44] sm:$0x1]  ;;  %v955_v30 = vor.u32 %v954_v26, %v951_v23  ;;  %v965_v31 = vor.u32 %v964_v29, %v960_v28 }
  0x50   : > { %2343 = vmatprep.mubr.msk.bf16.mxu0 %vm2670_vm1, %v2669_v1  ;;  %v968_v27 = vshll.u32 %v3079_v25, 16  ;;  %v1140_v23 = vrot.slane %v3063_v2, 5  ;;  %v1430_v29 = vshll.u32 %v3159_v42, 16  ;;  %v2173_v2 = vld [vmem:[%s2780_s8 + $0x24] sm:$0xf] }
  0x51   : > { %v908_v55 = vrot.slane %v907_v43, 4  ;;  %v956_v36 = vrot.slane %v955_v30, 4  ;;  %v2569_v43 = vld [vmem:[%s2780_s8 + $0x3c] sm:$0xff]   ;;  %v3178_v30 = vld [vmem:[%s2780_s8 + $0x28] sm:$0xf] }
  0x53   : > { %v961_v11 = vsel %vm2828_vm5, %v956_v36, %v960_v28 }
  0x55   : > { %2322 = vmatmul.mubr.msk.bf16.gmra.mxu1 %vm315_vm4, %v2056_v45  ;;  %v920_v45 = vshll.u32 %v3034_v37, 16 }
  0x56   : > { %2325 = vmatprep.mubr.msk.bf16.mxu1 %vm2670_vm1, %v2669_v1 }
  0x57   : > { %2344 = vmatmul.mubr.msk.bf16.gmra.mxu0 %vm315_vm4, %v2072_v49  ;;  %v899_v49 = vsel %vm2828_vm5, %v894_v38, %v898_v40  ;;  %v922_v61 = vrot.slane %v920_v45, 5  ;;  %v966_v38 = vrot.slane %v965_v31, 4  ;;  %v970_v40 = vrot.slane %v968_v27, 5 }
  0x58   : > { %2347 = vmatprep.mubr.msk.bf16.mxu0 %vm2670_vm1, %v2669_v1  ;;  %v2118_v56 = vcombine.low %v889_v44, %v899_v49  ;;  %v2132_v44 = vrot.slane %v2127_v3, 9  ;;  %v1434_v27 = vshrl.u32 %v3159_v42, 16  ;;  %v1445_v3 = vshrl.u32 %v2173_v2, 16 }
  0x59   : > { %v923_v15 = vsel %vm2828_vm5, %v918_v59, %v922_v61  ;;  %v1746_v59 = vsel %vm331_vm0, %v2206_v58, 0 }
  0x5d   : > { %2326 = vmatmul.mubr.msk.bf16.gmra.mxu1 %vm315_vm4, %v2057_v4  ;;  %v913_v4 = vsel %vm2828_vm5, %v908_v55, %v912_v41  ;;  %v1112_v41 = vrot.slane %v2965_v39, 5  ;;  %v1121_v55 = vrot.slane %v1119_v50, 4 }
  0x5e   : > { %2353 = vmatprep.mubr.msk.bf16.mxu1 %vm2670_vm1, %v2669_v1  ;;  %v2119_v47 = vcombine.low %v913_v4, %v923_v15  ;;  %v2134_v4 = vrot.slane %v2129_v7, 9  ;;  %v1133_v15 = vrot.slane %v3040_v17, 5  ;;  %v2131_v17 = vld [vmem:[%s2780_s8 + $0x3c] sm:$0xe]  ;;  %v2574_v7 = vld [vmem:[%s2780_s8 + $0x48] sm:$0xff]  }
  0x5f   : > { %2348 = vmatmul.mubr.msk.bf16.gmra.mxu0 %vm315_vm4, %v2073_v8  ;;  %v931_v8 = vor.u32 %v930_v60, %v927_v14  ;;  %v1114_v45 = vrot.slane %v1112_v41, 4  ;;  %v1113_v39 = vsel %vm2904_vm8, %v2132_v44, %v1112_v41  ;;  %v1573_v14 = vsel %vm331_vm0, %v2185_v57, 0  ;;  %v2570_v60 = vld [vmem:[%s2780_s8 + $0x18] sm:$0xff]  }
  0x60   : > { %2375 = vmatprep.mubr.msk.bf16.mxu0 %vm2670_vm1, %v2669_v1  ;;  %v1135_v16 = vrot.slane %v1133_v15, 4  ;;  %v1134_v28 = vsel %vm2904_vm8, %v2135_v19, %v1133_v15  ;;  %v1436_v41 = vrot.slane %v1434_v27, 4  ;;  %v1458_v44 = vshrl.u32 %v3178_v30, 16 }
  0x61   : > { %v932_v52 = vrot.slane %v931_v8, 4  ;;  %v1116_v49 = vsel %vm2904_vm8, %v1114_v45, %v1115_v46 }
  0x62   : > { %v2138_v53 = vcombine.low %v1113_v39, %v1116_v49  ;;  %v1447_v49 = vrot.slane %v1445_v3, 4 }
  0x65   : > { %2354 = vmatmul.mubr.msk.bf16.vlgmr.msra.gmra.mxu1 %vm315_vm4, %v2565_v32  ;;  %v937_v32 = vsel %vm2828_vm5, %v932_v52, %v936_v62  ;;  %v1126_v62 = vrot.slane %v3011_v6, 5  ;;  %v2572_v52 = vld [vmem:[%s2780_s8 + $0x30] sm:$0xff]  }
  0x66   : > { %2396 = vmatpush3.bf16.msra.mxu1 %v1178_v34  ;;  %2357 = vmatprep.mubr.msk.bf16.mxu1 %vm2670_vm1, %v2669_v1  ;;  %v2568_v34 = vld [vmem:[%s2780_s8 + $0x30] sm:$0xff]  }
  0x67   : > { %2376 = vmatmul.mubr.msk.bf16.vlgmr.msra.gmra.mxu0 %vm315_vm4, %v2117_v35  ;;  %2439 = vmatprep.subr.bf16.mxu1 %v2669_v1  ;;  %v2120_v35 = vcombine.low %v937_v32, %v947_v20  ;;  %v1128_v8 = vrot.slane %v1126_v62, 4  ;;  %v1127_v6 = vsel %vm2904_vm8, %v2134_v4, %v1126_v62  ;;  %v2136_v32 = vrot.slane %v2131_v17, 9 }
  0x68   : > { %2418 = vmatpush3.bf16.msra.mxu0 %v1320_v22  ;;  %2379 = vmatprep.mubr.msk.bf16.mxu0 %vm2670_vm1, %v2669_v1  ;;  %v971_v22 = vsel %vm2828_vm5, %v966_v38, %v970_v40  ;;  %v1143_v20 = vrot.slane %v3079_v25, 5  ;;  %v2172_v38 = vld [vmem:[%s2780_s8 + $0x20] sm:$0x1]  ;;  %v1432_v40 = vrot.slane %v1430_v29, 5  ;;  %v2197_v29 = vld [vmem:[%s2780_s8 + $0x24] sm:$0xe] }
  0x69   : > { %2461 = vmatprep.subr.bf16.mxu0 %v2669_v1  ;;  %v2121_v48 = vcombine.low %v961_v11, %v971_v22  ;;  %v1130_v13 = vsel %vm2904_vm8, %v1128_v8, %v1129_v9  ;;  %v1448_v11 = vshll.u32 %v2173_v2, 16  ;;  %v2573_v22 = vld [vmem:[%s2780_s8 + $0x3c] sm:$0xff]   ;;  %v1141_v25 = vsel %vm2904_vm8, %v2136_v32, %v1140_v23 }
  0x6a   : > { %v2140_v37 = vcombine.low %v1127_v6, %v1130_v13  ;;  %v1440_v46 = vshll.u32 %v2172_v38, 16  ;;  %v1437_v39 = vor.u32 %v1436_v41, %v1432_v40  ;;  %v1683_v6 = vrot.slane %v2172_v38, 5  ;;  %v2179_v2 = vld [vmem:[%s2780_s8 + $0x3c] sm:$0xf]  ;;  %v3228_v32 = vld [vmem:[%s2780_s8 + $0x40] sm:$0xf] }
  0x6b   : > { %v2202_v38 = vrot.slane %v2197_v29, 9  ;;  %v1496_v3 = vshll.u32 %v2179_v2, 16 }
  0x6d   : > { %2358 = vmatmul.mubr.msk.bf16.gmra.mxu1 %vm315_vm4, %v2566_v54  ;;  %v2133_v54 = vrot.slane %v2128_v51, 9  ;;  %v3193_v51 = vld [vmem:[%s2780_s8 + $0x2c] sm:$0x1] }
  0x6e   : > { %2361 = vmatprep.mubr.msk.bf16.mxu1 %vm2670_vm1, %v2669_v1  ;;  %v1464_v62 = vshll.u32 %v3193_v51, 16  ;;  %v1690_v41 = vrot.slane %v3193_v51, 5 }
  0x6f   : > { %2380 = vmatmul.mubr.msk.bf16.gmra.mxu0 %vm315_vm4, %v2118_v56  ;;  %v1122_v56 = vrot.slane %v3007_v21, 5  ;;  %v1120_v61 = vsel %vm2904_vm8, %v2133_v54, %v1119_v50  ;;  %v1450_v50 = vrot.slane %v1448_v11, 5  ;;  %v2196_v54 = vld [vmem:[%s2780_s8 + $0x18] sm:$0xe]  ;;  %v1502_v11 = vshll.u32 %v3228_v32, 16 }
  0x70   : > { %2383 = vmatprep.mubr.msk.bf16.mxu0 %vm2670_vm1, %v2669_v1  ;;  %v2201_v4 = vrot.slane %v2196_v54, 9  ;;  %v2181_v54 = vld [vmem:[%s2780_s8 + $0x44] sm:$0x1] }
  0x71   : > { %v1123_v21 = vsel %vm2904_vm8, %v1121_v55, %v1122_v56  ;;  %v1680_v55 = vrot.slane %v3159_v42, 5  ;;  %v2176_v56 = vld [vmem:[%s2780_s8 + $0x30] sm:$0xf]  ;;  %v1504_v51 = vrot.slane %v1502_v11, 5 }
  0x72   : > { %v2139_v0 = vcombine.low %v1120_v61, %v1123_v21  ;;  %v1438_v61 = vrot.slane %v1437_v39, 4  ;;  %v1451_v21 = vor.u32 %v1450_v50, %v1447_v49  ;;  %v1469_v8 = vshrl.u32 %v2176_v56, 16 }
  0x73   : > { %v1472_v9 = vshll.u32 %v2176_v56, 16  ;;  %v1498_v50 = vrot.slane %v1496_v3, 5  ;;  %v2182_v56 = vld [vmem:[%s2780_s8 + $0x48] sm:$0xf] }
  0x74   : > { %v1452_v19 = vrot.slane %v1451_v21, 4 }
  0x75   : > { %2362 = vmatmul.mubr.msk.bf16.gmra.mxu1 %vm315_vm4, %v2567_v5  ;;  %v1136_v5 = vrot.slane %v3058_v12, 5  ;;  %v1474_v42 = vrot.slane %v1472_v9, 5 }
  0x76   : > { %2365 = vmatprep.mubr.msk.bf16.mxu1 %vm2670_vm1, %v2669_v1 }
  0x77   : > { %2384 = vmatmul.mubr.msk.bf16.gmra.mxu0 %vm315_vm4, %v2119_v47  ;;  %v2170_v47 = vld [vmem:[%s2780_s8 + $0x18] sm:$0xf]  ;;  %v1137_v12 = vsel %vm2904_vm8, %v1135_v16, %v1136_v5  ;;  %v1466_v16 = vrot.slane %v1464_v62, 5 }
  0x78   : > { %2387 = vmatprep.mubr.msk.bf16.mxu0 %vm2670_vm1, %v2669_v1  ;;  %v1421_v24 = vshrl.u32 %v2170_v47, 16  ;;  %v1424_v26 = vshll.u32 %v2170_v47, 16  ;;  %v2141_v31 = vcombine.low %v1134_v28, %v1137_v12  ;;  %v1681_v47 = vsel %vm2904_vm8, %v2201_v4, %v1680_v55 }
  0x79   : > { %v1687_v28 = vrot.slane %v3178_v30, 5  ;;  %v1517_v4 = vshrl.u32 %v2182_v56, 16 }
  0x7a   : > { %v1426_v36 = vrot.slane %v1424_v26, 5 }
  0x7d   : > { %2366 = vmatmul.mubr.msk.bf16.gmra.mxu1 %vm315_vm4, %v2568_v34  ;;  %v1142_v34 = vrot.slane %v1140_v23, 4  ;;  %v2178_v23 = vld [vmem:[%s2780_s8 + $0x38] sm:$0x1] }
  0x7e   : > { %2369 = vmatprep.mubr.msk.bf16.mxu1 %vm2670_vm1, %v2669_v1  ;;  %v1697_v21 = vrot.slane %v2178_v23, 5 }
  0x7f   : > { %2388 = vmatmul.mubr.msk.bf16.gmra.mxu0 %vm315_vm4, %v2120_v35  ;;  %v1423_v35 = vrot.slane %v1421_v24, 4  ;;  %v1144_v45 = vsel %vm2904_vm8, %v1142_v34, %v1143_v20 }
  0x80   : > { %2391 = vmatprep.mubr.msk.bf16.mxu0 %vm2670_vm1, %v2669_v1  ;;  %v2142_v58 = vcombine.low %v1141_v25, %v1144_v45 }
  0x85   : > { %2370 = vmatmul.mubr.msk.bf16.gmra.mxu1 %vm315_vm4, %v2569_v43  ;;  %v1454_v43 = vshll.u32 %v3178_v30, 16  ;;  %v1493_v30 = vshrl.u32 %v2179_v2, 16 }
  0x86   : > { %2397 = vmatprep.mubr.msk.bf16.mxu1 %vm2670_vm1, %v2669_v1 }
  0x87   : > { %2392 = vmatmul.mubr.msk.bf16.gmra.mxu0 %vm315_vm4, %v2121_v48  ;;  %v1427_v48 = vor.u32 %v1426_v36, %v1423_v35  ;;  %v1456_v57 = vrot.slane %v1454_v43, 5  ;;  %v1488_v35 = vshll.u32 %v2178_v23, 16  ;;  %v1495_v49 = vrot.slane %v1493_v30, 4 }
  0x88   : > { %2419 = vmatprep.mubr.msk.bf16.mxu0 %vm2670_vm1, %v2669_v1 }
  0x89   : > { %v1457_v27 = vsel %vm2828_vm5, %v1452_v19, %v1456_v57  ;;  %v1490_v25 = vrot.slane %v1488_v35, 5  ;;  %v1499_v62 = vor.u32 %v1498_v50, %v1495_v49 }
  0x8d   : > { %2398 = vmatmul.mubr.msk.bf16.vlgmr.msra.gmra.mxu1 %vm315_vm4, %v2138_v53  ;;  %v1460_v53 = vrot.slane %v1458_v44, 4 }
  0x8e   : > { %2440 = vmatpush3.bf16.msra.mxu1 %v1573_v14  ;;  %2401 = vmatprep.mubr.msk.bf16.mxu1 %vm2670_vm1, %v2669_v1  ;;  %v1442_v14 = vrot.slane %v1440_v46, 5  ;;  %v1688_v46 = vsel %vm2904_vm8, %v2202_v38, %v1687_v28  ;;  %v2200_v38 = vld [vmem:[%s2780_s8 + $0x48] sm:$0xe] }
  0x8f   : > { %2420 = vmatmul.mubr.msk.bf16.vlgmr.msra.gmra.mxu0 %vm315_vm4, %v2570_v60  ;;  %v3201_v60 = vld [vmem:[%s2780_s8 + $0x34] sm:$0xf]  ;;  %v2205_v11 = vrot.slane %v2200_v38, 9 }
  0x90   : > { %2462 = vmatpush3.bf16.msra.mxu0 %v1746_v59  ;;  %2423 = vmatprep.mubr.msk.bf16.mxu0 %vm2670_vm1, %v2669_v1  ;;  %v1428_v59 = vrot.slane %v1427_v48, 4  ;;  %v1478_v13 = vshll.u32 %v3201_v60, 16  ;;  %v1482_v15 = vshrl.u32 %v3201_v60, 16  ;;  %v1694_v39 = vrot.slane %v3201_v60, 5 }
  0x92   : > { %v1433_v18 = vsel %vm2828_vm5, %v1428_v59, %v1432_v40  ;;  %v1480_v24 = vrot.slane %v1478_v13, 5  ;;  %v1484_v26 = vrot.slane %v1482_v15, 4  ;;  %v1689_v40 = vrot.slane %v1687_v28, 4 }
  0x93   : > { %v1701_v15 = vrot.slane %v3228_v32, 5 }
  0x94   : > { %v1485_v36 = vor.u32 %v1484_v26, %v1480_v24  ;;  %v1691_v48 = vsel %vm2904_vm8, %v1689_v40, %v1690_v41 }
  0x95   : > { %2402 = vmatmul.mubr.msk.bf16.gmra.mxu1 %vm315_vm4, %v2139_v0  ;;  %v1461_v0 = vor.u32 %v1460_v53, %v1456_v57  ;;  %v2198_v53 = vld [vmem:[%s2780_s8 + $0x30] sm:$0xe]  ;;  %v1703_v28 = vrot.slane %v1701_v15, 4 }
  0x96   : > { %2405 = vmatprep.mubr.msk.bf16.mxu1 %vm2670_vm1, %v2669_v1  ;;  %v1486_v45 = vrot.slane %v1485_v36, 4  ;;  %v2203_v59 = vrot.slane %v2198_v53, 9 }
  0x97   : > { %2424 = vmatmul.mubr.msk.bf16.gmra.mxu0 %vm315_vm4, %v2571_v10  ;;  %v1682_v10 = vrot.slane %v1680_v55, 4  ;;  %v1462_v5 = vrot.slane %v1461_v0, 4  ;;  %v2208_v55 = vcombine.low %v1688_v46, %v1691_v48  ;;  %v1512_v0 = vshll.u32 %v2181_v54, 16 }
  0x98   : > { %2427 = vmatprep.mubr.msk.bf16.mxu0 %vm2670_vm1, %v2669_v1  ;;  %v1491_v60 = vsel %vm2828_vm5, %v1486_v45, %v1490_v25 }
  0x99   : > { %v1684_v17 = vsel %vm2904_vm8, %v1682_v10, %v1683_v6  ;;  %v1467_v20 = vsel %vm2828_vm5, %v1462_v5, %v1466_v16  ;;  %v1695_v6 = vsel %vm2904_vm8, %v2203_v59, %v1694_v39  ;;  %v1514_v16 = vrot.slane %v1512_v0, 5  ;;  %v2199_v5 = vld [vmem:[%s2780_s8 + $0x3c] sm:$0xe] }
  0x9a   : > { %v2187_v43 = vcombine.low %v1457_v27, %v1467_v20  ;;  %v2204_v26 = vrot.slane %v2199_v5, 9 }
  0x9d   : > { %2406 = vmatmul.mubr.msk.bf16.gmra.mxu1 %vm315_vm4, %v2140_v37  ;;  %v1443_v37 = vsel %vm2828_vm5, %v1438_v61, %v1442_v14  ;;  %v1696_v61 = vrot.slane %v1694_v39, 4 }
  0x9e   : > { %2409 = vmatprep.mubr.msk.bf16.mxu1 %vm2670_vm1, %v2669_v1  ;;  %v2186_v12 = vcombine.low %v1433_v18, %v1443_v37  ;;  %v1500_v37 = vrot.slane %v1499_v62, 4 }
  0x9f   : > { %2428 = vmatmul.mubr.msk.bf16.gmra.mxu0 %vm315_vm4, %v2572_v52  ;;  %v1471_v52 = vrot.slane %v1469_v8, 4  ;;  %v1520_v8 = vshll.u32 %v2182_v56, 16  ;;  %v1698_v13 = vsel %vm2904_vm8, %v1696_v61, %v1697_v21 }
  0xa0   : > { %2431 = vmatprep.mubr.msk.bf16.mxu0 %vm2670_vm1, %v2669_v1  ;;  %v2209_v23 = vcombine.low %v1695_v6, %v1698_v13  ;;  %v1505_v29 = vsel %vm2828_vm5, %v1500_v37, %v1504_v51 }
  0xa1   : > { %v1475_v34 = vor.u32 %v1474_v42, %v1471_v52  ;;  %v1522_v52 = vrot.slane %v1520_v8, 5 }
  0xa3   : > { %v1476_v44 = vrot.slane %v1475_v34, 4 }
  0xa5   : > { %2410 = vmatmul.mubr.msk.bf16.gmra.mxu1 %vm315_vm4, %v2141_v31  ;;  %v2207_v31 = vcombine.low %v1681_v47, %v1684_v17  ;;  %v1481_v14 = vsel %vm2828_vm5, %v1476_v44, %v1480_v24  ;;  %v1519_v47 = vrot.slane %v1517_v4, 4  ;;  %v2184_v24 = vld [vmem:[%s2780_s8 + $0x50] sm:$0x1] }
  0xa6   : > { %2413 = vmatprep.mubr.msk.bf16.mxu1 %vm2670_vm1, %v2669_v1  ;;  %v2188_v18 = vcombine.low %v1481_v14, %v1491_v60  ;;  %v1536_v20 = vshll.u32 %v2184_v24, 16 }
  0xa7   : > { %2432 = vmatmul.mubr.msk.bf16.gmra.mxu0 %vm315_vm4, %v2573_v22  ;;  %v1506_v22 = vshrl.u32 %v3228_v32, 16  ;;  %v1523_v2 = vor.u32 %v1522_v52, %v1519_v47 }
  0xa8   : > { %2435 = vmatprep.mubr.msk.bf16.mxu0 %vm2670_vm1, %v2669_v1  ;;  %v1538_v30 = vrot.slane %v1536_v20, 5 }
  0xa9   : > { %v1508_v57 = vrot.slane %v1506_v22, 4  ;;  %v1524_v40 = vrot.slane %v1523_v2, 4 }
  0xad   : > { %2414 = vmatmul.mubr.msk.bf16.gmra.mxu1 %vm315_vm4, %v2142_v58  ;;  %v3250_v58 = vld [vmem:[%s2780_s8 + $0x4c] sm:$0xf]  ;;  %s155_s8 = smul.u32 5, %s2651_s12 }
  0xae   : > { %2441 = vmatprep.mubr.msk.bf16.mxu1 %vm2670_vm1, %v2669_v1  ;;  %v1526_v9 = vshll.u32 %v3250_v58, 16  ;;  %v1530_v10 = vshrl.u32 %v3250_v58, 16  ;;  %v1708_v35 = vrot.slane %v3250_v58, 5 }
  0xaf   : > { %2436 = vmatmul.mubr.msk.bf16.gmra.mxu0 %vm315_vm4, %v2574_v7  ;;  %v1509_v7 = vor.u32 %v1508_v57, %v1504_v51  ;;  %s1831_s27 = ssub.s32 16, %s155_s8 }
  0xb0   : > { %2463 = vmatprep.mubr.msk.bf16.mxu0 %vm2670_vm1, %v2669_v1  ;;  %v1528_v42 = vrot.slane %v1526_v9, 5  ;;  %v1532_v17 = vrot.slane %v1530_v10, 4  ;;  %v1710_v22 = vrot.slane %v1708_v35, 4  ;;  %v1709_v45 = vsel %vm2904_vm8, %v2205_v11, %v1708_v35  ;;  %p1832_p13 = scmp.gt.s32.totalorder %s1831_s27, 0  ;;  %p2217_p0 = scmp.lt.s32.totalorder %s1831_s27, 5 }
  0xb1   : > { %v1510_v19 = vrot.slane %v1509_v7, 4 }
  0xb2   : > { %v1533_v32 = vor.u32 %v1532_v17, %v1528_v42  ;;  %v1529_v44 = vsel %vm2828_vm5, %v1524_v40, %v1528_v42  ;;  %s1833_s28 = scalar_select %p1832_p13, %s1831_s27, 0 }
  0xb3   : > { %v1515_v27 = vsel %vm2828_vm5, %v1510_v19, %v1514_v16 }
  0xb4   : > { %v2189_v36 = vcombine.low %v1505_v29, %v1515_v27  ;;  %v1534_v41 = vrot.slane %v1533_v32, 4  ;;  %s3471_s28 = smov (!%p2217_p0, %s1833_s28), 5 }
  0xb5   : > { %2442 = vmatmul.mubr.msk.bf16.vlgmr.msra.gmra.mxu1 %vm315_vm4, %v2186_v12  ;;  %v1704_v12 = vrot.slane %v2181_v54, 5  ;;  %s2222_s30 = sshll.u32 %s3471_s28, 4 }
  0xb6   : > { %2445 = vmatprep.mubr.msk.bf16.mxu1 %vm2670_vm1, %v2669_v1  ;;  %v1539_v25 = vsel %vm2828_vm5, %v1534_v41, %v1538_v30 }
  0xb7   : > { %2464 = vmatmul.mubr.msk.bf16.vlgmr.msra.gmra.mxu0 %vm315_vm4, %v2207_v31  ;;  %v1702_v31 = vsel %vm2904_vm8, %v2204_v26, %v1701_v15  ;;  %v1705_v34 = vsel %vm2904_vm8, %v1703_v28, %v1704_v12  ;;  %v2190_v48 = vcombine.low %v1529_v44, %v1539_v25 }
  0xb8   : > { %2467 = vmatprep.mubr.msk.bf16.mxu0 %vm2670_vm1, %v2669_v1  ;;  %v2210_v3 = vcombine.low %v1702_v31, %v1705_v34 }
  0xbd   : > { %2446 = vmatmul.mubr.msk.bf16.gmra.mxu1 %vm315_vm4, %v2187_v43  ;;  %v1711_v43 = vrot.slane %v2184_v24, 5 }
  0xbe   : > { %2449 = vmatprep.mubr.msk.bf16.mxu1 %vm2670_vm1, %v2669_v1 }
  0xbf   : > { %2468 = vmatmul.mubr.msk.bf16.gmra.mxu0 %vm315_vm4, %v2208_v55  ;;  %v1712_v46 = vsel %vm2904_vm8, %v1710_v22, %v1711_v43 }
  0xc0   : > { %2471 = vmatprep.mubr.msk.bf16.mxu0 %vm2670_vm1, %v2669_v1  ;;  %v2211_v39 = vcombine.low %v1709_v45, %v1712_v46 }
  0xc5   : > { %2450 = vmatmul.mubr.msk.bf16.gmra.mxu1 %vm315_vm4, %v2188_v18 }
  0xc6   : > { %2453 = vmatprep.mubr.msk.bf16.mxu1 %vm2670_vm1, %v2669_v1 }
  0xc7   : > { %2472 = vmatmul.mubr.msk.bf16.gmra.mxu0 %vm315_vm4, %v2209_v23 }
  0xc8   : > { %2475 = vmatprep.mubr.msk.bf16.mxu0 %vm2670_vm1, %v2669_v1 }
  0xcd   : > { %2454 = vmatmul.mubr.msk.bf16.gmra.mxu1 %vm315_vm4, %v2189_v36 }
  0xce   : > { %2457 = vmatprep.mubr.msk.bf16.mxu1 %vm2670_vm1, %v2669_v1 }
  0xcf   : > { %2476 = vmatmul.mubr.msk.bf16.gmra.mxu0 %vm315_vm4, %v2210_v3 }
  0xd0   : > { %2479 = vmatprep.mubr.msk.bf16.mxu0 %vm2670_vm1, %v2669_v1 }
  0xd5   : > { %2458 = vmatmul.mubr.msk.bf16.gmra.mxu1 %vm315_vm4, %v2190_v48 }
  0xd7   : > { %2480 = vmatmul.mubr.msk.bf16.gmra.mxu0 %vm315_vm4, %v2211_v39 }
  0xe7   : > { %v369_v49 = vpop.f32.mrf.mxu0 }
  0xe9   : > { %v2289_v33 = vpop.f32.mrf.mxu0 }
  0xeb   : > { %v393_v50 = vpop.f32.mrf.mxu1  ;;  %v372_v51 = vpop.f32.mrf.mxu0 }
  0xed   : > { %v2301_v57 = vpop.f32.mrf.mxu1  ;;  %v2290_v53 = vpop.f32.mrf.mxu0 }
  0xef   : > { %v396_v54 = vpop.f32.mrf.mxu1  ;;  %v377_v1 = vpop.f32.mrf.mxu0 }
  0xf1   : > { %v2302_v55 = vpop.f32.mrf.mxu1  ;;  %v2293_v56 = vpop.f32.mrf.mxu0 }
  0xf3   : > { %v380_v58 = vpop.f32.mrf.mxu0 }
  0xf5   : > { %v401_v14 = vpop.f32.mrf.mxu1  ;;  %v2294_v63 = vpop.f32.mrf.mxu0 }
  0xf7   : > { %v2305_v59 = vpop.f32.mrf.mxu1  ;;  %v385_v61 = vpop.f32.mrf.mxu0 }
  0xf9   : > { %v404_v21 = vpop.f32.mrf.mxu1  ;;  %v2297_v60 = vpop.f32.mrf.mxu0 }
  0xfb   : > { %v2306_v62 = vpop.f32.mrf.mxu1  ;;  %v388_v7 = vpop.f32.mrf.mxu0 }
  0xfd   : > { %v485_v0 = vpop.f32.mrf.mxu1  ;;  %v2298_v4 = vpop.f32.mrf.mxu0 }
  0xfe   : > { %v486_v8 = vadd.f32 %v485_v0, %v369_v49 }
  0xff   : > { %v2311_v9 = vpop.f32.mrf.mxu1  ;;  %v646_v10 = vpop.f32.mrf.mxu0 }
 0x100   : > { %v685_v6 = vadd.f32 %v646_v10, %v486_v8 }
 0x101   : > { %v488_v13 = vpop.f32.mrf.mxu1  ;;  %v2333_v15 = vpop.f32.mrf.mxu0 }
 0x102   : > { %v489_v18 = vadd.f32 %v488_v13, %v372_v51 }
 0x103   : > { %v2312_v37 = vpop.f32.mrf.mxu1  ;;  %v649_v19 = vpop.f32.mrf.mxu0 }
 0x104   : > { %v686_v16 = vadd.f32 %v649_v19, %v489_v18 }
 0x105   : > { %v493_v5 = vpop.f32.mrf.mxu1  ;;  %v2334_v47 = vpop.f32.mrf.mxu0 }
 0x106   : > { %v494_v52 = vadd.f32 %v493_v5, %v377_v1 }
 0x107   : > { %v2315_v42 = vpop.f32.mrf.mxu1  ;;  %v654_v17 = vpop.f32.mrf.mxu0 }
 0x108   : > { %v687_v23 = vadd.f32 %v654_v17, %v494_v52 }
 0x109   : > { %v496_v24 = vpop.f32.mrf.mxu1  ;;  %v2337_v26 = vpop.f32.mrf.mxu0 }
 0x10a   : > { %v497_v28 = vadd.f32 %v496_v24, %v380_v58 }
 0x10b   : > { %v2316_v12 = vpop.f32.mrf.mxu1  ;;  %v657_v29 = vpop.f32.mrf.mxu0 }
 0x10c   : > { %v688_v27 = vadd.f32 %v657_v29, %v497_v28 }
 0x10d   : > { %v501_v2 = vpop.f32.mrf.mxu1  ;;  %v2338_v32 = vpop.f32.mrf.mxu0 }
 0x10e   : > { %v502_v20 = vadd.f32 %v501_v2, %v385_v61 }
 0x10f   : > { %v2319_v31 = vpop.f32.mrf.mxu1  ;;  %v662_v34 = vpop.f32.mrf.mxu0 }
 0x110   : > { %v689_v35 = vadd.f32 %v662_v34, %v502_v20 }
 0x111   : > { %v504_v36 = vpop.f32.mrf.mxu1  ;;  %v2341_v38 = vpop.f32.mrf.mxu0 }
 0x112   : > { %v505_v40 = vadd.f32 %v504_v36, %v388_v7 }
 0x113   : > { %v2320_v41 = vpop.f32.mrf.mxu1  ;;  %v665_v30 = vpop.f32.mrf.mxu0 }
 0x114   : > { %v690_v3 = vadd.f32 %v665_v30, %v505_v40 }
 0x115   : > { %v509_v11 = vpop.f32.mrf.mxu1  ;;  %v2342_v22 = vpop.f32.mrf.mxu0 }
 0x116   : > { %v510_v43 = vadd.f32 %v509_v11, %v393_v50 }
 0x117   : > { %v2323_v44 = vpop.f32.mrf.mxu1  ;;  %v670_v25 = vpop.f32.mrf.mxu0 }
 0x118   : > { %v691_v45 = vadd.f32 %v670_v25, %v510_v43 }
 0x119   : > { %v512_v46 = vpop.f32.mrf.mxu1  ;;  %v2345_v48 = vpop.f32.mrf.mxu0 }
 0x11a   : > { %v513_v39 = vadd.f32 %v512_v46, %v396_v54 }
 0x11b   : > { %v2324_v49 = vpop.f32.mrf.mxu1  ;;  %v673_v33 = vpop.f32.mrf.mxu0 }
 0x11c   : > { %v692_v51 = vadd.f32 %v673_v33, %v513_v39 }
 0x11d   : > { %v517_v57 = vpop.f32.mrf.mxu1  ;;  %v2346_v53 = vpop.f32.mrf.mxu0 }
 0x11e   : > { %v518_v1 = vadd.f32 %v517_v57, %v401_v14 }
 0x11f   : > { %v2327_v55 = vpop.f32.mrf.mxu1  ;;  %v678_v56 = vpop.f32.mrf.mxu0 }
 0x120   : > { %v693_v58 = vadd.f32 %v678_v56, %v518_v1 }
 0x121   : > { %v520_v63 = vpop.f32.mrf.mxu1  ;;  %v2349_v59 = vpop.f32.mrf.mxu0 }
 0x122   : > { %v521_v61 = vadd.f32 %v520_v63, %v404_v21 }
 0x123   : > { %v2328_v60 = vpop.f32.mrf.mxu1  ;;  %v681_v50 = vpop.f32.mrf.mxu0 }
 0x124   : > { %v694_v62 = vadd.f32 %v681_v50, %v521_v61 }
 0x125   : > { %v788_v7 = vpop.f32.mrf.mxu1  ;;  %v2350_v0 = vpop.f32.mrf.mxu0 }
 0x126   : > { %v827_v4 = vadd.f32 %v788_v7, %v685_v6 }
 0x127   : > { %v2355_v8 = vpop.f32.mrf.mxu1  ;;  %v1041_v54 = vpop.f32.mrf.mxu0 }
 0x128   : > { %v3303_v9 = vadd.f32 %v1041_v54, %v827_v4 }
 0x129   : > { %v791_v10 = vpop.f32.mrf.mxu1  ;;  %v2377_v13 = vpop.f32.mrf.mxu0 }
 0x12a   : > { %v828_v15 = vadd.f32 %v791_v10, %v686_v16 }
 0x12b   : > { %v2356_v14 = vpop.f32.mrf.mxu1  ;;  %v1044_v18 = vpop.f32.mrf.mxu0 }
 0x12c   : > { %v3305_v37 = vadd.f32 %v1044_v18, %v828_v15 }
 0x12d   : > { %v796_v19 = vpop.f32.mrf.mxu1  ;;  %v2378_v5 = vpop.f32.mrf.mxu0 }
 0x12e   : > { %v829_v21 = vadd.f32 %v796_v19, %v687_v23 }
 0x12f   : > { %v2359_v47 = vpop.f32.mrf.mxu1  ;;  %v1049_v52 = vpop.f32.mrf.mxu0 }
 0x130   : > { %v3307_v42 = vadd.f32 %v1049_v52, %v829_v21 }
 0x131   : > { %v799_v17 = vpop.f32.mrf.mxu1  ;;  %v2381_v6 = vpop.f32.mrf.mxu0 }
 0x132   : > { %v830_v24 = vadd.f32 %v799_v17, %v688_v27 }
 0x133   : > { %v2360_v26 = vpop.f32.mrf.mxu1  ;;  %v1052_v28 = vpop.f32.mrf.mxu0 }
 0x134   : > { %v3309_v12 = vadd.f32 %v1052_v28, %v830_v24 }
 0x135   : > { %v804_v29 = vpop.f32.mrf.mxu1  ;;  %v2382_v16 = vpop.f32.mrf.mxu0 }
 0x136   : > { %v831_v2 = vadd.f32 %v804_v29, %v689_v35 }
 0x137   : > { %v2363_v32 = vpop.f32.mrf.mxu1  ;;  %v1057_v20 = vpop.f32.mrf.mxu0 }
 0x138   : > { %v3311_v31 = vadd.f32 %v1057_v20, %v831_v2 }
 0x139   : > { %v807_v34 = vpop.f32.mrf.mxu1  ;;  %v2385_v23 = vpop.f32.mrf.mxu0 }
 0x13a   : > { %v832_v36 = vadd.f32 %v807_v34, %v690_v3 }
 0x13b   : > { %v2364_v38 = vpop.f32.mrf.mxu1  ;;  %v1060_v40 = vpop.f32.mrf.mxu0 }
 0x13c   : > { %v3313_v41 = vadd.f32 %v1060_v40, %v832_v36 }
 0x13d   : > { %v812_v30 = vpop.f32.mrf.mxu1  ;;  %v2386_v27 = vpop.f32.mrf.mxu0 }
 0x13e   : > { %v833_v11 = vadd.f32 %v812_v30, %v691_v45 }
 0x13f   : > { %v2367_v22 = vpop.f32.mrf.mxu1  ;;  %v1065_v43 = vpop.f32.mrf.mxu0 }
 0x140   : > { %v3315_v44 = vadd.f32 %v1065_v43, %v833_v11  ;;  %v1837_v43 = vlaneseq }
 0x141   : > { %v815_v25 = vpop.f32.mrf.mxu1  ;;  %v2389_v35 = vpop.f32.mrf.mxu0 }
 0x142   : > { %v834_v46 = vadd.f32 %v815_v25, %v692_v51 }
 0x143   : > { %v2368_v48 = vpop.f32.mrf.mxu1  ;;  %v1068_v39 = vpop.f32.mrf.mxu0 }
 0x144   : > { %v3317_v49 = vadd.f32 %v1068_v39, %v834_v46 }
 0x145   : > { %v820_v33 = vpop.f32.mrf.mxu1  ;;  %v2390_v3 = vpop.f32.mrf.mxu0 }
 0x146   : > { %v835_v57 = vadd.f32 %v820_v33, %v693_v58  ;;  %v3353_v3 = vshrl.u32 %v1837_v43, 7 }
 0x147   : > { %v2371_v53 = vpop.f32.mrf.mxu1  ;;  %v1073_v1 = vpop.f32.mrf.mxu0 }
 0x148   : > { %v3319_v55 = vadd.f32 %v1073_v1, %v835_v57  ;;  %v3356_v1 = vstv %s2222_s30 }
 0x149   : > { %v823_v56 = vpop.f32.mrf.mxu1  ;;  %v2393_v45 = vpop.f32.mrf.mxu0  ;;  %vm1849_vm9 = vcmp.lt.s32.totalorder %v3353_v3, %v3356_v1 }
 0x14a   : > { %v836_v63 = vadd.f32 %v823_v56, %v694_v62 }
 0x14b   : > { %v2372_v59 = vpop.f32.mrf.mxu1  ;;  %v1076_v61 = vpop.f32.mrf.mxu0 }
 0x14c   : > { %v3321_v60 = vadd.f32 %v1076_v61, %v836_v63  ;;  %v1839_v63 = vadd.s32 8, %v3353_v3 }
 0x14d   : > { %v1214_v50 = vpop.f32.mrf.mxu1  ;;  %v2394_v51 = vpop.f32.mrf.mxu0 }
 0x14e   : > { %v1253_v25 = vadd.f32 %v1214_v50, %v3303_v9  ;;  %vm1850_vm10 = vcmp.lt.s32.totalorder %v1839_v63, %v3356_v1 }
 0x14f   : > { %v2399_v7 = vpop.f32.mrf.mxu1  ;;  %v1356_v0 = vpop.f32.mrf.mxu0 }
 0x150   : > { %v1395_v48 = vadd.f32 %v1356_v0, %v1253_v25  ;;  %v1840_v0 = vadd.s32 16, %v3353_v3 }
 0x151   : > { %v1217_v4 = vpop.f32.mrf.mxu1  ;;  %v2421_v8 = vpop.f32.mrf.mxu0 }
 0x152   : > { %v1254_v57 = vadd.f32 %v1217_v4, %v3305_v37  ;;  %vm1851_vm11 = vcmp.lt.s32.totalorder %v1840_v0, %v3356_v1 }
 0x153   : > { %v2400_v54 = vpop.f32.mrf.mxu1  ;;  %v1359_v58 = vpop.f32.mrf.mxu0 }
 0x154   : > { %v1396_v59 = vadd.f32 %v1359_v58, %v1254_v57 }
 0x155   : > { %v1222_v10 = vpop.f32.mrf.mxu1  ;;  %v2422_v13 = vpop.f32.mrf.mxu0 }
 0x156   : > { %v1255_v51 = vadd.f32 %v1222_v10, %v3307_v42 }
 0x157   : > { %v2403_v15 = vpop.f32.mrf.mxu1  ;;  %v1364_v14 = vpop.f32.mrf.mxu0 }
 0x158   : > { %v1397_v8 = vadd.f32 %v1364_v14, %v1255_v51 }
 0x159   : > { %v3323_v18 = vpop.f32.mrf.mxu1  ;;  %v2425_v62 = vpop.f32.mrf.mxu0 }
 0x15a   : > { %v1256_v62 = vadd.f32 %v3323_v18, %v3309_v12 }
 0x15b   : > { %v2404_v19 = vpop.f32.mrf.mxu1  ;;  %v3325_v5 = vpop.f32.mrf.mxu0 }
 0x15c   : > { %v1398_v14 = vadd.f32 %v3325_v5, %v1256_v62 }
 0x15d   : > { %v3327_v21 = vpop.f32.mrf.mxu1  ;;  %v2426_v47 = vpop.f32.mrf.mxu0 }
 0x15e   : > { %v1257_v12 = vadd.f32 %v3327_v21, %v3311_v31 }
 0x15f   : > { %v2407_v52 = vpop.f32.mrf.mxu1  ;;  %v3329_v17 = vpop.f32.mrf.mxu0 }
 0x161   : > { %v3332_v6 = vpop.f32.mrf.mxu1  ;;  %v2429_v24 = vpop.f32.mrf.mxu0 }
 0x163   : > { %v2408_v26 = vpop.f32.mrf.mxu1  ;;  %v3334_v28 = vpop.f32.mrf.mxu0 }
 0x165   : > { %v3336_v29 = vpop.f32.mrf.mxu1  ;;  %v2430_v16 = vpop.f32.mrf.mxu0 }
 0x166   : > { %v1841_v16 = vadd.s32 24, %v3353_v3 }
 0x167   : > { %v2411_v2 = vpop.f32.mrf.mxu1  ;;  %v3338_v32 = vpop.f32.mrf.mxu0 }
 0x168   : > { %vm1852_vm12 = vcmp.lt.s32.totalorder %v1841_v16, %v3356_v1  ;;  %v1845_v16 = vadd.s32 56, %v3353_v3 }
 0x169   : > { %v3340_v20 = vpop.f32.mrf.mxu1  ;;  %v2433_v34 = vpop.f32.mrf.mxu0 }
 0x16a   : > { %vm1856_vm0 = vcmp.lt.s32.totalorder %v1845_v16, %v3356_v1 }
 0x16b   : > { %v2412_v23 = vpop.f32.mrf.mxu1  ;;  %v3342_v36 = vpop.f32.mrf.mxu0 }
 0x16d   : > { %v3344_v38 = vpop.f32.mrf.mxu1  ;;  %v2434_v40 = vpop.f32.mrf.mxu0 }
 0x16f   : > { %v2415_v30 = vpop.f32.mrf.mxu1  ;;  %v3346_v27 = vpop.f32.mrf.mxu0 }
 0x171   : > { %v3348_v11 = vpop.f32.mrf.mxu1  ;;  %v2437_v22 = vpop.f32.mrf.mxu0 }
 0x173   : > { %v2416_v35 = vpop.f32.mrf.mxu1  ;;  %v3351_v46 = vpop.f32.mrf.mxu0 }
 0x175   : > { %v1609_v39 = vpop.f32.mrf.mxu1  ;;  %v2438_v33 = vpop.f32.mrf.mxu0 }
 0x176   : > { %v1648_v53 = vadd.f32 %v1609_v39, %v1395_v48  ;;  %v1842_v48 = vadd.s32 32, %v3353_v3  ;;  %v1399_v39 = vadd.f32 %v3329_v17, %v1257_v12 }
 0x177   : > { %v2443_v56 = vpop.f32.mrf.mxu1  ;;  %v1782_v45 = vpop.f32.mrf.mxu0 }
 0x178   : > { %v1821_v9 = vadd.f32 %v1782_v45, %v1648_v53  ;;  %v1258_v56 = vadd.f32 %v3332_v6, %v3313_v41  ;;  %vm1853_vm13 = vcmp.lt.s32.totalorder %v1842_v48, %v3356_v1 }
 0x179   : > { %v1612_v61 = vpop.f32.mrf.mxu1  ;;  %v2465_v50 = vpop.f32.mrf.mxu0 }
 0x17a   : > { %v1649_v7 = vadd.f32 %v1612_v61, %v1396_v59  ;;  %v1879_v54 = vsel %vm1849_vm9, %v1821_v9, 0.0  ;;  %v1843_v61 = vadd.s32 40, %v3353_v3  ;;  %v1400_v50 = vadd.f32 %v3334_v28, %v1258_v56 }
 0x17b   : > { %v2444_v37 = vpop.f32.mrf.mxu1  ;;  %v1785_v4 = vpop.f32.mrf.mxu0  ;;  %v1904_v42 = vmul.f32 %v1879_v54, %v1879_v54 }
 0x17c   : > { %v1822_v13 = vadd.f32 %v1785_v4, %v1649_v7  ;;  %v1259_v37 = vadd.f32 %v3336_v29, %v3315_v44  ;;  %vm1854_vm14 = vcmp.lt.s32.totalorder %v1843_v61, %v3356_v1 }
 0x17d   : > { %v1617_v15 = vpop.f32.mrf.mxu1  ;;  %v2466_v58 = vpop.f32.mrf.mxu0 }
 0x17e   : > { %v1650_v19 = vadd.f32 %v1617_v15, %v1397_v8  ;;  %v1880_v47 = vsel %vm1850_vm10, %v1822_v13, 0.0  ;;  %v1844_v15 = vadd.s32 48, %v3353_v3  ;;  %v1401_v58 = vadd.f32 %v3338_v32, %v1259_v37 }
 0x17f   : > { %v2447_v10 = vpop.f32.mrf.mxu1  ;;  %v1889_v52 = vadd.f32 %v1880_v47, %v1879_v54  ;;  %v1905_v24 = vmul.f32 %v1880_v47, %v1880_v47  ;;  %v1790_v26 = vpop.f32.mrf.mxu0 }
 0x180   : > { %v1823_v2 = vadd.f32 %v1790_v26, %v1650_v19  ;;  %vm1855_vm15 = vcmp.lt.s32.totalorder %v1844_v15, %v3356_v1 }
 0x181   : > { %v1620_v34 = vpop.f32.mrf.mxu1  ;;  %v1914_v23 = vadd.f32 %v1905_v24, %v1904_v42  ;;  %v2469_v40 = vpop.f32.mrf.mxu0  ;;  %v1260_v42 = vadd.f32 %v3340_v20, %v3317_v49 }
 0x182   : > { %v1651_v18 = vadd.f32 %v1620_v34, %v1398_v14  ;;  %v1881_v30 = vsel %vm1851_vm11, %v1823_v2, 0.0  ;;  %v1261_v40 = vadd.f32 %v3344_v38, %v3319_v55 }
 0x183   : > { %v2448_v22 = vpop.f32.mrf.mxu1  ;;  %v1890_v43 = vadd.f32 %v1889_v52, %v1881_v30  ;;  %v1906_v25 = vmul.f32 %v1881_v30, %v1881_v30  ;;  %v1793_v35 = vpop.f32.mrf.mxu0  ;;  %v1402_v14 = vadd.f32 %v3342_v36, %v1260_v42 }
 0x184   : > { %v1824_v5 = vadd.f32 %v1793_v35, %v1651_v18 }
 0x185   : > { %v1625_v33 = vpop.f32.mrf.mxu1  ;;  %v1915_v57 = vadd.f32 %v1914_v23, %v1906_v25  ;;  %v2470_v53 = vpop.f32.mrf.mxu0  ;;  %v1403_v25 = vadd.f32 %v3346_v27, %v1261_v40 }
 0x186   : > { %v1652_v31 = vadd.f32 %v1625_v33, %v1399_v39  ;;  %v1882_v21 = vsel %vm1852_vm12, %v1824_v5, 0.0  ;;  %v1262_v5 = vadd.f32 %v3348_v11, %v3321_v60 }
 0x187   : > { %v2451_v45 = vpop.f32.mrf.mxu1  ;;  %v1891_v63 = vadd.f32 %v1890_v43, %v1882_v21  ;;  %v1907_v59 = vmul.f32 %v1882_v21, %v1882_v21  ;;  %v1798_v9 = vpop.f32.mrf.mxu0  ;;  %v1846_v43 = vadd.s32 64, %v3353_v3 }
 0x188   : > { %v1825_v17 = vadd.f32 %v1798_v9, %v1652_v31  ;;  %v1847_v31 = vadd.s32 72, %v3353_v3  ;;  %v1404_v21 = vadd.f32 %v3351_v46, %v1262_v5 }
 0x189   : > { %v1628_v51 = vpop.f32.mrf.mxu1  ;;  %v1916_v7 = vadd.f32 %v1915_v57, %v1907_v59  ;;  %v2473_v0 = vpop.f32.mrf.mxu0  ;;  %vm1857_vm1 = vcmp.lt.s32.totalorder %v1846_v43, %v3356_v1 }
 0x18a   : > { %v1653_v41 = vadd.f32 %v1628_v51, %v1400_v50  ;;  %v1883_v6 = vsel %vm1853_vm13, %v1825_v17, 0.0  ;;  %vm1858_vm2 = vcmp.lt.s32.totalorder %v1847_v31, %v3356_v1 }
 0x18b   : > { %v2452_v4 = vpop.f32.mrf.mxu1  ;;  %v1892_v8 = vadd.f32 %v1891_v63, %v1883_v6  ;;  %v1908_v54 = vmul.f32 %v1883_v6, %v1883_v6  ;;  %v1801_v13 = vpop.f32.mrf.mxu0 }
 0x18c   : > { %v1826_v28 = vadd.f32 %v1801_v13, %v1653_v41 }
 0x18d   : > { %v1633_v62 = vpop.f32.mrf.mxu1  ;;  %v1917_v19 = vadd.f32 %v1916_v7, %v1908_v54  ;;  %v2474_v47 = vpop.f32.mrf.mxu0 }
 0x18e   : > { %v1654_v44 = vadd.f32 %v1633_v62, %v1401_v58  ;;  %v1884_v29 = vsel %vm1854_vm14, %v1826_v28, 0.0 }
 0x18f   : > { %v2455_v10 = vpop.f32.mrf.mxu1  ;;  %v1893_v52 = vadd.f32 %v1892_v8, %v1884_v29  ;;  %v1909_v24 = vmul.f32 %v1884_v29, %v1884_v29  ;;  %v1806_v26 = vpop.f32.mrf.mxu0 }
 0x190   : > { %v1827_v32 = vadd.f32 %v1806_v26, %v1654_v44 }
 0x191   : > { %v1636_v2 = vpop.f32.mrf.mxu1  ;;  %v1918_v34 = vadd.f32 %v1917_v19, %v1909_v24  ;;  %v2477_v23 = vpop.f32.mrf.mxu0 }
 0x192   : > { %v1655_v49 = vadd.f32 %v1636_v2, %v1402_v14  ;;  %v1885_v20 = vsel %vm1855_vm15, %v1827_v32, 0.0 }
 0x193   : > { %v2456_v12 = vpop.f32.mrf.mxu1  ;;  %v1894_v18 = vadd.f32 %v1893_v52, %v1885_v20  ;;  %v1910_v30 = vmul.f32 %v1885_v20, %v1885_v20  ;;  %v1809_v22 = vpop.f32.mrf.mxu0 }
 0x194   : > { %v1828_v36 = vadd.f32 %v1809_v22, %v1655_v49 }
 0x195   : > { %v1641_v35 = vpop.f32.mrf.mxu1  ;;  %v1919_v48 = vadd.f32 %v1918_v34, %v1910_v30  ;;  %v2478_v39 = vpop.f32.mrf.mxu0 }
 0x196   : > { %v1656_v55 = vadd.f32 %v1641_v35, %v1403_v25  ;;  %v1886_v38 = vsel %vm1856_vm0, %v1828_v36, 0.0 }
 0x197   : > { %v2459_v33 = vpop.f32.mrf.mxu1  ;;  %v1895_v57 = vadd.f32 %v1894_v18, %v1886_v38  ;;  %v1911_v53 = vmul.f32 %v1886_v38, %v1886_v38  ;;  %v1814_v56 = vpop.f32.mrf.mxu0 }
 0x198   : > { %v1829_v27 = vadd.f32 %v1814_v56, %v1656_v55 }
 0x199   : > { %v1644_v45 = vpop.f32.mrf.mxu1  ;;  %v1920_v63 = vadd.f32 %v1919_v48, %v1911_v53  ;;  %v2481_v59 = vpop.f32.mrf.mxu0 }
 0x19a   : > { %v1657_v9 = vadd.f32 %v1644_v45, %v1404_v21  ;;  %v1887_v61 = vsel %vm1857_vm1, %v1829_v27, 0.0 }
 0x19b   : > { %v2460_v50 = vpop.f32.mrf.mxu1  ;;  %v1896_v60 = vadd.f32 %v1895_v57, %v1887_v61  ;;  %v1912_v11 = vmul.f32 %v1887_v61, %v1887_v61  ;;  %v1817_v17 = vpop.f32.mrf.mxu0 }
 0x19c   : > { %v1830_v51 = vadd.f32 %v1817_v17, %v1657_v9 }
 0x19d   : > { %v1921_v7 = vadd.f32 %v1920_v63, %v1912_v11  ;;  %v2482_v0 = vpop.f32.mrf.mxu0 }
 0x19e   : > { %v1888_v37 = vsel %vm1858_vm2, %v1830_v51, 0.0 }
 0x19f   : > { %v1897_v3 = vadd.f32 %v1896_v60, %v1888_v37  ;;  %v1913_v41 = vmul.f32 %v1888_v37, %v1888_v37 }
 0x1a1   : > { %v1898_v46 = vrot.slane %v1897_v3, 4  ;;  %v1922_v6 = vadd.f32 %v1921_v7, %v1913_v41 }
 0x1a3   : > { %v1899_v4 = vadd.f32 %v1898_v46, %v1897_v3  ;;  %v1923_v8 = vrot.slane %v1922_v6, 4 }
 0x1a5   : > { %v1900_v54 = vrot.slane %v1899_v4, 2  ;;  %v1924_v13 = vadd.f32 %v1923_v8, %v1922_v6 }
 0x1a7   : > { %v1901_v15 = vadd.f32 %v1900_v54, %v1899_v4  ;;  %v1925_v58 = vrot.slane %v1924_v13, 2 }
 0x1a9   : > { %v1902_v28 = vrot.slane %v1901_v15, 1  ;;  %v1926_v62 = vadd.f32 %v1925_v58, %v1924_v13  ;;  %1932 = sbr.rel (%p2223_p1) target bundleno = 432 (0x1b0), region = 32 }
 0x1ab   : > { %v1903_v19 = vadd.f32 %v1902_v28, %v1901_v15  ;;  %v1927_v47 = vrot.slane %v1926_v62, 1 }
 0x1ad   : > { %v1928_v1 = vadd.f32 %v1927_v47, %v1926_v62 }
 0x1ae   : > { %v2671_v42 = vmov 0.0  }
 0x1af   : > { %1933 = vst [vmem:[%s148_s3] sm:$0x3] %v2671_v42 }
 0x1b0 PF: > { %vm1935_vm3 = vcmask 1040384   ;;  %s2225_s4 = sshll.u32 %s2655_s13, 5  ;;  %s1953_s5 = sshll.u32 %s148_s3, 4  ;;  %s1954_s5 = int_to_ptr.vmem [resolvable:$true] %s1953_s5 }
 0x1b1   : > { %v1936_v29 = vsel %vm1935_vm3, %v1903_v19, %v1928_v1  ;;  %s1951_s17 = scalar_lea.hbm %s3450_s2, %s2225_s4  ;;  %s1940_s12 = scalar_lea.sflag [#allocation3], %s146_s26 }
 0x1b2   : > { %s2575_s29 = scalar_lea.vmem %s1954_s5, 32  ;;  %s2672_s18 = smov [#allocation2]  }
 0x1b3   : > { %p2576_p2 = scmp.ne.s32.totalorder %s1954_s5, %s2575_s29  ;;  %s2579_s23 = sshll.u32 %s2672_s18, 4  ;;  %s2580_s23 = int_to_ptr.vmem [resolvable:$false] %s2579_s23 }
 0x1b4   : > { %s2581_s13 = scalar_lea.vmem %s2580_s23, 64  ;;  %p2582_p6 = scmp.lt.s32.totalorder %s1954_s5, %s2580_s23 }
 0x1b5   : > { %p2577_p4 = pnand %p2576_p2, %p2737_p3  ;;  %p2583_p7 = scmp.lt.s32.totalorder %s2581_s13, %s2575_s29 }
 0x1b6   : > { %v1934_v44 = vld [vmem:[%s148_s3] sm:$0x3] }
 0x1b7   : > { %v1937_v10 = vadd.f32 %v1936_v29, %v1934_v44  ;;  %p2578_p5 = pneg %p2577_p4  ;;  %p2584_p8 = por %p2583_p7, %p2582_p6 }
 0x1b9   : > { %1938 = vst [vmem:[%s148_s3] sm:$0x3] %v1937_v10  ;;  %p2585_p10 = pnand %p2584_p8, %p2578_p5 }
 0x1bb   : > { %2588 = shalt.err (!%p2585_p10)
}
 0x1bc   : > { %s2589_s24 = scalar_lea.hbm %s1951_s17, 32  ;;  %s2593_s27 = scalar_lea.hbm %s3450_s2, 64 }
 0x1bd   : > { %p2590_p11 = scmp.ne.s32.totalorder %s1951_s17, %s2589_s24  ;;  %p2594_p0 = scmp.lt.s32.totalorder %s1951_s17, %s3450_s2 }
 0x1be   : > { %p2595_p1 = scmp.lt.s32.totalorder %s2593_s27, %s2589_s24 }
 0x1bf   : > { %p2591_p12 = pnand %p2590_p11, %p2737_p3 }
 0x1c0   : > { %p2596_p2 = por %p2595_p1, %p2594_p0 }
 0x1c1   : > { %p2592_p13 = pneg %p2591_p12 }
 0x1c3   : > { %p2597_p4 = pnand %p2596_p2, %p2592_p13 }
 0x1c5   : > { %2600 = shalt.err (!%p2597_p4)
}
 0x1c6   : > { %2486 = dma.vmem_to_hbm [thread:$0]  (%p2737_p3), %s1954_s5, 32, %s1951_s17, %s1940_s12  }
 0x1c7 PF: > { %p2492_p5 = scmp.ge.s32.totalorder %s2667_s16, 2  ;;  %s1965_s3 = sand.u32 1, %s2639_s9  }
 0x1c8   : > { %s1966_s4 = scalar_lea.sflag [#allocation3], %s1965_s3 }
 0x1c9   : > { %p2489_p6 = pnand %p2492_p5, %p2747_p9 }
 0x1cb   : > { %p2490_p7 = pneg %p2489_p6 }
 0x1cd   : > { %2634 = dma.done.wait (%p2490_p7), %s1966_s4, 32  }
 0x1ce   : > { %2636 = vsyncadd (%p2490_p7), %s1966_s4, 4294967264  ;;  %s15_s16 = sadd.s32 1, %s2667_s16   ;;  %s3457_s9 = smov %s2643_s10 }
 0x1cf   : > { %p12_p8 = scmp.ge.s32.totalorder %s15_s16, 10   ;;  %s3458_s10 = smov %s2647_s11 }
 0x1d0   : > { %s3459_s11 = smov %s2755_s25  ;;  %s3460_s12 = smov %s2659_s14 }
 0x1d1   : > { %s3461_s13 = smov %s2663_s15  ;;  %s3462_s14 = smov %s3465_s19 }
 0x1d2   : > { %s3463_s15 = smov %s3469_s20  ;;  %14 = sbr.rel (!%p12_p8) target bundleno = 5 (0x5), region = 78 }
 0x1d7   :  { %1971 = vsyncpa [#allocation3], 1 }
 0x1d8   :  { %1973 = vsyncpa [#allocation3 + $0x1], 1 }

</bundles_post_ra>
